<compile_context>
chip_gen: v7x
topology: tpu7x:2x2x1
jax: 0.10.0
libtpu: 0.0.40
codegen_flags: <defaults>
</compile_context>

<pallas_src>
import jax
import jax.numpy as jnp
from jax.experimental import pallas as pl
from jax.experimental.pallas import tpu as pltpu


# ----------------------------------------------------------------- kernel ---

def net_fused_kernel(beta_ref, x_ref, adj_ref,
                     w1_ref, b1_ref, w2_ref, b2_ref, o_ref, hv_ref):
    H = w1_ref.shape[1]

    # ---- lin1 + relu (bf16 MXU operands, f32 accumulation) -----------------
    h = jnp.dot(x_ref[...].astype(jnp.bfloat16),
                w1_ref[...].astype(jnp.bfloat16),
                preferred_element_type=jnp.float32)
    h = jnp.maximum(h + b1_ref[...], 0.0)                       # [N, H] f32

    # Constant ones column of the fused value matrix [h | 1]; written once and
    # reused by both AGNN layers.
    hv_ref[:, H:] = jnp.ones((hv_ref.shape[0], 1), hv_ref.dtype)

    def agnn(h, beta=None):
        # F.normalize(h, p=2, dim=-1) with eps, via rsqrt on the EUP.
        inv_norm = jax.lax.rsqrt(
            jnp.maximum(jnp.sum(h * h, axis=-1, keepdims=True), 1e-24))
        xn = h * inv_norm                                       # row norm <= 1
        lhs = xn if beta is None else xn * beta                 # beta folded into ONE operand
        # s = beta * (xn @ xn^T); bf16 operands (MXU-native on v5e/v6e/v7x),
        # f32 accumulation, contraction on axis 1 of both (no materialized .T).
        s = jax.lax.dot_general(lhs.astype(jnp.bfloat16), xn.astype(jnp.bfloat16),
                                (((1,), (1,)), ((), ())),
                                preferred_element_type=jnp.float32)   # [N, N] f32
        # Softmax without row-max or shift: |s| <= |beta| so exp(s) cannot
        # overflow, and any constant shift cancels between numerator and
        # denominator.  Non-edges are zeroed with a single multiply by the
        # 0/1 bf16 adjacency (read here to bound its live range); self-loops
        # guarantee every row has a nonzero entry.
        # TODO(synk): re-introduce a -|beta| shift if beta is ever trained to
        # large magnitude (f32 exp overflow near ~88).
        e = jnp.exp(s).astype(jnp.bfloat16) * adj_ref[...]            # [N, N] bf16
        # FUSED aggregation + denominator: a single e-push through the MXU
        # computes e @ [h | 1]; column H is the softmax row-sum.
        hv_ref[:, :H] = h.astype(jnp.bfloat16)
        out = jnp.dot(e, hv_ref[...], preferred_element_type=jnp.float32)  # [N, H+1]
        return out[:, :H] * pl.reciprocal(out[:, H:], approx=True)

    h = agnn(h)                    # AGNNConv(requires_grad=False): beta fixed = 1
    h = agnn(h, beta_ref[0])       # AGNNConv(requires_grad=True)

    # ---- lin2 (lane-dense, padded to 128 classes) + log_softmax -------------
    # Padded columns carry a -1e30 bias so exp(y - m) == 0 there; the wrapper
    # slices off the padding.
    y = jnp.dot(h.astype(jnp.bfloat16), w2_ref[...].astype(jnp.bfloat16),
                preferred_element_type=jnp.float32) + b2_ref[...]
    m = jnp.max(y, axis=-1, keepdims=True)
    lse = jnp.log(jnp.sum(jnp.exp(y - m), axis=-1, keepdims=True)) + m
    o_ref[...] = y - lse


# ---------------------------------------------------------------- wrapper ---

def net_forward(x, adj, params):
    N, F = x.shape
    H = params["w1"].shape[1]
    C = params["w2"].shape[1]
    CP = 128                                   # lane-dense padded class dim

    # Layer-1 AGNNConv has requires_grad=False -> beta is a fixed buffer (=1),
    # specialized away inside the kernel.  Only the learnable beta is passed.
    beta2 = params["beta2"].astype(jnp.float32)                  # (1,) in SMEM

    # Compact 0/1 adjacency mask (bf16 is exact for 0/1): half the HBM DMA.
    adj_bf16 = adj.astype(jnp.bfloat16)

    # Pad lin2 to a 128-wide, lane-dense output.  Padded columns get zero
    # weights and a large negative bias so log_softmax ignores them.
    w2p = jnp.zeros((H, CP), jnp.float32).at[:, :C].set(params["w2"])
    b2p = jnp.full((1, CP), -1e30, jnp.float32).at[:, :C].set(params["b2"])

    out_padded = pl.pallas_call(
        net_fused_kernel,
        out_shape=jax.ShapeDtypeStruct((N, CP), jnp.float32),
        grid=(1,),
        in_specs=[
            pl.BlockSpec(memory_space=pltpu.MemorySpace.SMEM),   # beta2 (1,)
            pl.BlockSpec((N, F), lambda i: (0, 0)),              # x
            pl.BlockSpec((N, N), lambda i: (0, 0)),              # adj mask (bf16)
            pl.BlockSpec((F, H), lambda i: (0, 0)),              # w1
            pl.BlockSpec((1, H), lambda i: (0, 0)),              # b1
            pl.BlockSpec((H, CP), lambda i: (0, 0)),             # w2 (padded)
            pl.BlockSpec((1, CP), lambda i: (0, 0)),             # b2 (padded)
        ],
        out_specs=pl.BlockSpec((N, CP), lambda i: (0, 0)),
        scratch_shapes=[pltpu.VMEM((N, H + 1), jnp.bfloat16)],   # fused [h | 1]
        compiler_params=pltpu.CompilerParams(
            dimension_semantics=("arbitrary",),
            vmem_limit_bytes=48 * 1024 * 1024),
    )(beta2, x, adj_bf16, params["w1"], params["b1"], w2p, b2p)
    # TODO(synk): for real Planetoid sizes (N ~ 2708+) and for v7x dual-core
    # use: tile the destination-node axis with a "parallel" grid dimension,
    # stream the source-node axis as an "arbitrary" reduction axis with a VMEM
    # accumulator (no row-max needed thanks to |s| <= |beta|), keep adj in a
    # compact dtype, and size vmem_limit_bytes to the adj/s/e tiles.
    return out_padded[:, :C]


# ------------------------------------------------------ pure-JAX reference ---

def net_reference(x, adj, params):
    h = jnp.maximum(x @ params["w1"] + params["b1"], 0.0)

    def agnn(h, beta):
        xn = h / jnp.maximum(
            jnp.sqrt(jnp.sum(h * h, axis=-1, keepdims=True)), 1e-12)
        s = beta * (xn @ xn.T)
        s = jnp.where(adj > 0.0, s, -jnp.inf)
        p = jax.nn.softmax(s, axis=-1)
        return p @ h

    h = agnn(h, params["beta1"][0])
    h = agnn(h, params["beta2"][0])
    y = h @ params["w2"] + params["b2"]
    return jax.nn.log_softmax(y, axis=-1)


# ------------------------------------------------------------------- main ---

if __name__ == "__main__":
    N, F, H, C, E = 128, 64, 16, 8, 512   # nodes, features, hidden, classes, edges

    key = jax.random.PRNGKey(0)
    k_x, k_e, k_w1, k_b1, k_w2, k_b2 = jax.random.split(key, 6)

    # Synthetic "Planetoid" node features, row-normalized (NormalizeFeatures).
    x = jax.random.uniform(k_x, (N, F), dtype=jnp.float32)
    x = x / jnp.maximum(jnp.sum(x, axis=-1, keepdims=True), 1e-12)

    # Synthetic edge_index [2, E]: row 0 = source j, row 1 = target i.
    edge_index = jax.random.randint(k_e, (2, E), 0, N, dtype=jnp.int32)
    # Dense adjacency mask adj[i, j] = 1 if edge j -> i, plus self-loops.
    adj = jnp.zeros((N, N), jnp.float32).at[edge_index[1], edge_index[0]].set(1.0)
    adj = jnp.maximum(adj, jnp.eye(N, dtype=jnp.float32))

    # Deterministic parameter init (PyTorch Linear-style uniform bounds).
    lim1 = 1.0 / jnp.sqrt(jnp.float32(F))
    lim2 = 1.0 / jnp.sqrt(jnp.float32(H))
    params = {
        "w1": jax.random.uniform(k_w1, (F, H), jnp.float32, -lim1, lim1),
        "b1": jax.random.uniform(k_b1, (1, H), jnp.float32, -lim1, lim1),
        "beta1": jnp.ones((1,), jnp.float32),   # fixed beta (buffer)
        "beta2": jnp.ones((1,), jnp.float32),   # learnable beta, init 1.0
        "w2": jax.random.uniform(k_w2, (H, C), jnp.float32, -lim2, lim2),
        "b2": jax.random.uniform(k_b2, (1, C), jnp.float32, -lim2, lim2),
    }

    out = net_forward(x, adj, params)
    out = jax.block_until_ready(out)

    assert out.shape == (N, C)
    assert bool(jnp.all(jnp.isfinite(out)))

    ref = net_reference(x, adj, params)
    # bf16 MXU operands + approx reciprocal: validate at a 2e-2 tolerance.
    assert bool(jnp.allclose(out, ref, atol=2e-2, rtol=2e-2)), (
        float(jnp.max(jnp.abs(out - ref))))

    print("KERNEL_OK")
</pallas_src>

<mosaic_0001>
module attributes {stable_mosaic.version = 11 : i64} {
  func.func @net_fused_kernel(%arg0: i32, %arg1: memref<1xf32, #tpu.memory_space<smem>>, %arg2: memref<128x64xf32, #tpu.memory_space<vmem>>, %arg3: memref<128x128xbf16, #tpu.memory_space<vmem>>, %arg4: memref<64x16xf32, #tpu.memory_space<vmem>>, %arg5: memref<1x16xf32, #tpu.memory_space<vmem>>, %arg6: memref<16x128xf32, #tpu.memory_space<vmem>>, %arg7: memref<1x128xf32, #tpu.memory_space<vmem>>, %arg8: memref<128x128xf32, #tpu.memory_space<vmem>>, %arg9: memref<128x17xbf16, #tpu.memory_space<vmem>>) attributes {dimension_semantics = [#tpu.dimension_semantics<arbitrary>], iteration_bounds = array<i64: 1>, scalar_prefetch = 0 : i64, scratch_operands = 1 : i64, tpu.core_type = #tpu.core_type<tc>, window_params = [{transform_indices = @transform_0, window_bounds = array<i64: 1>}, {pipeline_mode = #tpu.pipeline_mode<synchronous>, transform_indices = @transform_1, window_bounds = array<i64: 128, 64>}, {pipeline_mode = #tpu.pipeline_mode<synchronous>, transform_indices = @transform_2, window_bounds = array<i64: 128, 128>}, {pipeline_mode = #tpu.pipeline_mode<synchronous>, transform_indices = @transform_3, window_bounds = array<i64: 64, 16>}, {pipeline_mode = #tpu.pipeline_mode<synchronous>, transform_indices = @transform_4, window_bounds = array<i64: 1, 16>}, {pipeline_mode = #tpu.pipeline_mode<synchronous>, transform_indices = @transform_5, window_bounds = array<i64: 16, 128>}, {pipeline_mode = #tpu.pipeline_mode<synchronous>, transform_indices = @transform_6, window_bounds = array<i64: 1, 128>}, {pipeline_mode = #tpu.pipeline_mode<synchronous>, transform_indices = @transform_7, window_bounds = array<i64: 128, 128>}]} {
    %c0 = arith.constant 0 : index
    %c0_0 = arith.constant 0 : index
    %0 = vector.load %arg2[%c0, %c0_0] : memref<128x64xf32, #tpu.memory_space<vmem>>, vector<128x64xf32>
    %1 = arith.truncf %0 : vector<128x64xf32> to vector<128x64xbf16>
    %c0_1 = arith.constant 0 : index
    %c0_2 = arith.constant 0 : index
    %2 = vector.load %arg4[%c0_1, %c0_2] : memref<64x16xf32, #tpu.memory_space<vmem>>, vector<64x16xf32>
    %3 = arith.truncf %2 : vector<64x16xf32> to vector<64x16xbf16>
    %cst = arith.constant dense<0.000000e+00> : vector<128x16xf32>
    %4 = tpu.matmul %1, %3, %cst {dimension_numbers = #tpu.dot_dimension_numbers<[1], [0], [0], [1], [0, 0, 1, 1], [], []>} : vector<128x64xbf16>, vector<64x16xbf16>, vector<128x16xf32> -> vector<128x16xf32>
    %c0_3 = arith.constant 0 : index
    %c0_4 = arith.constant 0 : index
    %5 = vector.load %arg5[%c0_3, %c0_4] : memref<1x16xf32, #tpu.memory_space<vmem>>, vector<1x16xf32>
    %6 = vector.broadcast %5 : vector<1x16xf32> to vector<128x16xf32>
    %7 = arith.addf %4, %6 : vector<128x16xf32>
    %cst_5 = arith.constant 0.000000e+00 : f32
    %8 = vector.broadcast %cst_5 : f32 to vector<128x16xf32>
    %9 = arith.maximumf %7, %8 : vector<128x16xf32>
    %cst_6 = arith.constant 1.000000e+00 : bf16
    %10 = vector.broadcast %cst_6 : bf16 to vector<128x1xbf16>
    %c0_7 = arith.constant 0 : index
    %c16 = arith.constant 16 : index
    %11 = vector.load %arg9[%c0_7, %c16] : memref<128x17xbf16, #tpu.memory_space<vmem>>, vector<128x1xbf16>
    tpu.vector_store %arg9[%c0_7, %c16], %10 {strides = array<i32>} : memref<128x17xbf16, #tpu.memory_space<vmem>>, vector<128x1xbf16>,
    %12 = arith.mulf %9, %9 : vector<128x16xf32>
    %cst_8 = arith.constant dense<0.000000e+00> : vector<128xf32>
    %13 = vector.multi_reduction <add>, %12, %cst_8 [1] : vector<128x16xf32> to vector<128xf32>
    %14 = vector.shape_cast %13 : vector<128xf32> to vector<128x1xf32>
    %cst_9 = arith.constant 1.000000e-24 : f32
    %15 = vector.broadcast %cst_9 : f32 to vector<128x1xf32>
    %16 = arith.maximumf %14, %15 : vector<128x1xf32>
    %17 = math.rsqrt %16 : vector<128x1xf32>
    %18 = vector.broadcast %17 : vector<128x1xf32> to vector<128x16xf32>
    %19 = arith.mulf %9, %18 : vector<128x16xf32>
    %20 = arith.truncf %19 : vector<128x16xf32> to vector<128x16xbf16>
    %21 = arith.truncf %19 : vector<128x16xf32> to vector<128x16xbf16>
    %cst_10 = arith.constant dense<0.000000e+00> : vector<128x128xf32>
    %22 = tpu.matmul %20, %21, %cst_10 {dimension_numbers = #tpu.dot_dimension_numbers<[1], [1], [0], [0], [0, 0, 1, 0], [], []>} : vector<128x16xbf16>, vector<128x16xbf16>, vector<128x128xf32> -> vector<128x128xf32>
    %23 = math.exp %22 : vector<128x128xf32>
    %24 = arith.truncf %23 : vector<128x128xf32> to vector<128x128xbf16>
    %c0_11 = arith.constant 0 : index
    %c0_12 = arith.constant 0 : index
    %25 = vector.load %arg3[%c0_11, %c0_12] : memref<128x128xbf16, #tpu.memory_space<vmem>>, vector<128x128xbf16>
    %26 = arith.mulf %24, %25 : vector<128x128xbf16>
    %27 = arith.truncf %9 : vector<128x16xf32> to vector<128x16xbf16>
    %c0_13 = arith.constant 0 : index
    %c0_14 = arith.constant 0 : index
    %28 = vector.load %arg9[%c0_13, %c0_14] : memref<128x17xbf16, #tpu.memory_space<vmem>>, vector<128x16xbf16>
    tpu.vector_store %arg9[%c0_13, %c0_14], %27 {strides = array<i32>} : memref<128x17xbf16, #tpu.memory_space<vmem>>, vector<128x16xbf16>,
    %c0_15 = arith.constant 0 : index
    %c0_16 = arith.constant 0 : index
    %29 = vector.load %arg9[%c0_15, %c0_16] : memref<128x17xbf16, #tpu.memory_space<vmem>>, vector<128x17xbf16>
    %cst_17 = arith.constant dense<0.000000e+00> : vector<128x17xf32>
    %30 = tpu.matmul %26, %29, %cst_17 {dimension_numbers = #tpu.dot_dimension_numbers<[1], [0], [0], [1], [0, 0, 1, 1], [], []>} : vector<128x128xbf16>, vector<128x17xbf16>, vector<128x17xf32> -> vector<128x17xf32>
    %31 = vector.extract_strided_slice %30 {offsets = [0, 0], sizes = [128, 16], strides = [1, 1]} : vector<128x17xf32> to vector<128x16xf32>
    %32 = vector.extract_strided_slice %30 {offsets = [0, 16], sizes = [128, 1], strides = [1, 1]} : vector<128x17xf32> to vector<128x1xf32>
    %33 = tpu.reciprocal %32 {approx = true} : vector<128x1xf32> -> vector<128x1xf32>
    %34 = vector.broadcast %33 : vector<128x1xf32> to vector<128x16xf32>
    %35 = arith.mulf %31, %34 : vector<128x16xf32>
    %c0_18 = arith.constant 0 : index
    %36 = memref.load %arg1[%c0_18] : memref<1xf32, #tpu.memory_space<smem>>
    %37 = arith.mulf %35, %35 : vector<128x16xf32>
    %cst_19 = arith.constant dense<0.000000e+00> : vector<128xf32>
    %38 = vector.multi_reduction <add>, %37, %cst_19 [1] : vector<128x16xf32> to vector<128xf32>
    %39 = vector.shape_cast %38 : vector<128xf32> to vector<128x1xf32>
    %cst_20 = arith.constant 1.000000e-24 : f32
    %40 = vector.broadcast %cst_20 : f32 to vector<128x1xf32>
    %41 = arith.maximumf %39, %40 : vector<128x1xf32>
    %42 = math.rsqrt %41 : vector<128x1xf32>
    %43 = vector.broadcast %42 : vector<128x1xf32> to vector<128x16xf32>
    %44 = arith.mulf %35, %43 : vector<128x16xf32>
    %45 = vector.broadcast %36 : f32 to vector<128x16xf32>
    %46 = arith.mulf %44, %45 : vector<128x16xf32>
    %47 = arith.truncf %46 : vector<128x16xf32> to vector<128x16xbf16>
    %48 = arith.truncf %44 : vector<128x16xf32> to vector<128x16xbf16>
    %cst_21 = arith.constant dense<0.000000e+00> : vector<128x128xf32>
    %49 = tpu.matmul %47, %48, %cst_21 {dimension_numbers = #tpu.dot_dimension_numbers<[1], [1], [0], [0], [0, 0, 1, 0], [], []>} : vector<128x16xbf16>, vector<128x16xbf16>, vector<128x128xf32> -> vector<128x128xf32>
    %50 = math.exp %49 : vector<128x128xf32>
    %51 = arith.truncf %50 : vector<128x128xf32> to vector<128x128xbf16>
    %c0_22 = arith.constant 0 : index
    %c0_23 = arith.constant 0 : index
    %52 = vector.load %arg3[%c0_22, %c0_23] : memref<128x128xbf16, #tpu.memory_space<vmem>>, vector<128x128xbf16>
    %53 = arith.mulf %51, %52 : vector<128x128xbf16>
    %54 = arith.truncf %35 : vector<128x16xf32> to vector<128x16xbf16>
    %c0_24 = arith.constant 0 : index
    %c0_25 = arith.constant 0 : index
    %55 = vector.load %arg9[%c0_24, %c0_25] : memref<128x17xbf16, #tpu.memory_space<vmem>>, vector<128x16xbf16>
    tpu.vector_store %arg9[%c0_24, %c0_25], %54 {strides = array<i32>} : memref<128x17xbf16, #tpu.memory_space<vmem>>, vector<128x16xbf16>,
    %c0_26 = arith.constant 0 : index
    %c0_27 = arith.constant 0 : index
    %56 = vector.load %arg9[%c0_26, %c0_27] : memref<128x17xbf16, #tpu.memory_space<vmem>>, vector<128x17xbf16>
    %cst_28 = arith.constant dense<0.000000e+00> : vector<128x17xf32>
    %57 = tpu.matmul %53, %56, %cst_28 {dimension_numbers = #tpu.dot_dimension_numbers<[1], [0], [0], [1], [0, 0, 1, 1], [], []>} : vector<128x128xbf16>, vector<128x17xbf16>, vector<128x17xf32> -> vector<128x17xf32>
    %58 = vector.extract_strided_slice %57 {offsets = [0, 0], sizes = [128, 16], strides = [1, 1]} : vector<128x17xf32> to vector<128x16xf32>
    %59 = vector.extract_strided_slice %57 {offsets = [0, 16], sizes = [128, 1], strides = [1, 1]} : vector<128x17xf32> to vector<128x1xf32>
    %60 = tpu.reciprocal %59 {approx = true} : vector<128x1xf32> -> vector<128x1xf32>
    %61 = vector.broadcast %60 : vector<128x1xf32> to vector<128x16xf32>
    %62 = arith.mulf %58, %61 : vector<128x16xf32>
    %63 = arith.truncf %62 : vector<128x16xf32> to vector<128x16xbf16>
    %c0_29 = arith.constant 0 : index
    %c0_30 = arith.constant 0 : index
    %64 = vector.load %arg6[%c0_29, %c0_30] : memref<16x128xf32, #tpu.memory_space<vmem>>, vector<16x128xf32>
    %65 = arith.truncf %64 : vector<16x128xf32> to vector<16x128xbf16>
    %cst_31 = arith.constant dense<0.000000e+00> : vector<128x128xf32>
    %66 = tpu.matmul %63, %65, %cst_31 {dimension_numbers = #tpu.dot_dimension_numbers<[1], [0], [0], [1], [0, 0, 1, 1], [], []>} : vector<128x16xbf16>, vector<16x128xbf16>, vector<128x128xf32> -> vector<128x128xf32>
    %c0_32 = arith.constant 0 : index
    %c0_33 = arith.constant 0 : index
    %67 = vector.load %arg7[%c0_32, %c0_33] : memref<1x128xf32, #tpu.memory_space<vmem>>, vector<1x128xf32>
    %68 = vector.broadcast %67 : vector<1x128xf32> to vector<128x128xf32>
    %69 = arith.addf %66, %68 : vector<128x128xf32>
    %cst_34 = arith.constant dense<0xFF800000> : vector<128xf32>
    %70 = vector.multi_reduction <maximumf>, %69, %cst_34 [1] : vector<128x128xf32> to vector<128xf32>
    %71 = vector.shape_cast %70 : vector<128xf32> to vector<128x1xf32>
    %72 = vector.broadcast %71 : vector<128x1xf32> to vector<128x128xf32>
    %73 = arith.subf %69, %72 : vector<128x128xf32>
    %74 = math.exp %73 : vector<128x128xf32>
    %cst_35 = arith.constant dense<0.000000e+00> : vector<128xf32>
    %75 = vector.multi_reduction <add>, %74, %cst_35 [1] : vector<128x128xf32> to vector<128xf32>
    %76 = vector.shape_cast %75 : vector<128xf32> to vector<128x1xf32>
    %77 = math.log %76 : vector<128x1xf32>
    %78 = arith.addf %77, %71 : vector<128x1xf32>
    %79 = vector.broadcast %78 : vector<128x1xf32> to vector<128x128xf32>
    %80 = arith.subf %69, %79 : vector<128x128xf32>
    %c0_36 = arith.constant 0 : index
    %c0_37 = arith.constant 0 : index
    %81 = vector.load %arg8[%c0_36, %c0_37] : memref<128x128xf32, #tpu.memory_space<vmem>>, vector<128x128xf32>
    tpu.vector_store %arg8[%c0_36, %c0_37], %80 {strides = array<i32>} : memref<128x128xf32, #tpu.memory_space<vmem>>, vector<128x128xf32>,
    return
  }
  func.func @transform_0(%arg0: i32) -> i32 {
    %c0_i32 = arith.constant 0 : i32
    %c0_i32_0 = arith.constant 0 : i32
    return %c0_i32 : i32
  }
  func.func @transform_1(%arg0: i32) -> (i32, i32) {
    %c0_i32 = arith.constant 0 : i32
    %c0_i32_0 = arith.constant 0 : i32
    %c0_i32_1 = arith.constant 0 : i32
    return %c0_i32, %c0_i32_0 : i32, i32
  }
  func.func @transform_2(%arg0: i32) -> (i32, i32) {
    %c0_i32 = arith.constant 0 : i32
    %c0_i32_0 = arith.constant 0 : i32
    %c0_i32_1 = arith.constant 0 : i32
    return %c0_i32, %c0_i32_0 : i32, i32
  }
  func.func @transform_3(%arg0: i32) -> (i32, i32) {
    %c0_i32 = arith.constant 0 : i32
    %c0_i32_0 = arith.constant 0 : i32
    %c0_i32_1 = arith.constant 0 : i32
    return %c0_i32, %c0_i32_0 : i32, i32
  }
  func.func @transform_4(%arg0: i32) -> (i32, i32) {
    %c0_i32 = arith.constant 0 : i32
    %c0_i32_0 = arith.constant 0 : i32
    %c0_i32_1 = arith.constant 0 : i32
    return %c0_i32, %c0_i32_0 : i32, i32
  }
  func.func @transform_5(%arg0: i32) -> (i32, i32) {
    %c0_i32 = arith.constant 0 : i32
    %c0_i32_0 = arith.constant 0 : i32
    %c0_i32_1 = arith.constant 0 : i32
    return %c0_i32, %c0_i32_0 : i32, i32
  }
  func.func @transform_6(%arg0: i32) -> (i32, i32) {
    %c0_i32 = arith.constant 0 : i32
    %c0_i32_0 = arith.constant 0 : i32
    %c0_i32_1 = arith.constant 0 : i32
    return %c0_i32, %c0_i32_0 : i32, i32
  }
  func.func @transform_7(%arg0: i32) -> (i32, i32) {
    %c0_i32 = arith.constant 0 : i32
    %c0_i32_0 = arith.constant 0 : i32
    %c0_i32_1 = arith.constant 0 : i32
    return %c0_i32, %c0_i32_0 : i32, i32
  }
}

</mosaic_0001>

<bundles_post_ra>
// kernel: tpu_custom_call.1
= control target key start
LH: loop header
LB: loop body
LE: loop exit
PB: predicated region body
PF: predicated region fallthrough
CT: control target
= control target key end

     0   :  { %vm73_vm0 = vcmask 523264   ;;  %s3300_s0 = inlined_call_operand.<no memory space> [shape: f32[1], index: 0, kind: input, shape index: {}]   ;;  %s3301_s1 = inlined_call_operand.vmem [shape: f32[128,64], index: 1, kind: input, shape index: {}]   ;;  %s3302_s2 = inlined_call_operand.vmem [shape: bf16[128,128], index: 2, kind: input, shape index: {}]   ;;  %s3303_s3 = inlined_call_operand.vmem [shape: f32[64,16], index: 3, kind: input, shape index: {}]   ;;  %s3304_s4 = inlined_call_operand.vmem [shape: f32[1,16], index: 4, kind: input, shape index: {}]   ;;  %s3305_s5 = inlined_call_operand.vmem [shape: f32[16,128], index: 5, kind: input, shape index: {}]   ;;  %s3306_s6 = inlined_call_operand.vmem [shape: f32[1,128], index: 6, kind: input, shape index: {}]   ;;  %s3307_s7 = inlined_call_operand.hbm [shape: f32[128,128], index: 7, kind: output, shape index: {}]  }
   0x1   :  { %v54_v0 = vld [vmem:[%s3303_s3] sm:$0xff]  ;;  %v55_v1 = vld [vmem:[%s3303_s3 + $0x8] sm:$0xff]  ;;  %v56_v2 = vld [vmem:[%s3303_s3 + $0x10] sm:$0xff] }
   0x2   :  { %v62_v3 = vpack.c.bf16 %v55_v1, %v54_v0  ;;  %v57_v4 = vld [vmem:[%s3303_s3 + $0x18] sm:$0xff]  ;;  %v58_v6 = vld [vmem:[%s3303_s3 + $0x20] sm:$0xff]  ;;  %v59_v7 = vld [vmem:[%s3303_s3 + $0x28] sm:$0xff] }
   0x3   :  { %v63_v5 = vpack.c.bf16 %v57_v4, %v56_v2  ;;  %v30_v8 = vld [vmem:[%s3301_s1] sm:$0xff]  ;;  %v31_v9 = vld [vmem:[%s3301_s1 + $0x8] sm:$0xff]  ;;  %v64_v11 = vpack.c.bf16 %v59_v7, %v58_v6  ;;  %v60_v12 = vld [vmem:[%s3303_s3 + $0x30] sm:$0xff] }
   0x4   :  { %1925 = vmatprep.subr.bf16.mxu0 %v62_v3  ;;  %v46_v10 = vpack.c.bf16 %v31_v9, %v30_v8  ;;  %v61_v13 = vld [vmem:[%s3303_s3 + $0x38] sm:$0xff]  ;;  %v32_v15 = vld [vmem:[%s3301_s1 + $0x10] sm:$0xff]  ;;  %v34_v17 = vld [vmem:[%s3301_s1 + $0x20] sm:$0xff] }
   0x5   :  { %1926 = vmatpush3.bf16.msra.mxu0 %v62_v3  ;;  %v65_v14 = vpack.c.bf16 %v61_v13, %v60_v12  ;;  %v33_v16 = vld [vmem:[%s3301_s1 + $0x18] sm:$0xff]  ;;  %v35_v18 = vld [vmem:[%s3301_s1 + $0x28] sm:$0xff] }
   0x6   :  { %1927 = vmatprep.subr.bf16.mxu0 %v63_v5  ;;  %1933 = vmatprep.mubr.msk.bf16.mxu0 %vm73_vm0, %v46_v10  ;;  %v47_v19 = vpack.c.bf16 %v33_v16, %v32_v15  ;;  %v48_v20 = vpack.c.bf16 %v35_v18, %v34_v17 }
   0x9   :  { %1928 = vmatpush3.bf16.msra.mxu0 %v63_v5 }
   0xa   :  { %1929 = vmatprep.subr.bf16.mxu0 %v64_v11 }
   0xd   :  { %1930 = vmatpush3.bf16.msra.mxu0 %v64_v11 }
   0xe   :  { %1931 = vmatprep.subr.bf16.mxu0 %v65_v14 }
  0x11   :  { %1932 = vmatpush3.bf16.msra.mxu0 %v65_v14 }
  0x12   :  { %13 = vsyncpa [#allocation5], 0  ;;  %v36_v21 = vld [vmem:[%s3301_s1 + $0x30] sm:$0xff]  ;;  %v37_v22 = vld [vmem:[%s3301_s1 + $0x38] sm:$0xff]  ;;  %vm211_vm1 = vcmask 138368   ;;  %vm236_vm2 = vcmask 130048  }
  0x13   :  { %v38_v23 = vld [vmem:[%s3301_s1 + $0x40] sm:$0xff]  ;;  %v39_v24 = vld [vmem:[%s3301_s1 + $0x48] sm:$0xff]  ;;  %v49_v25 = vpack.c.bf16 %v37_v22, %v36_v21  ;;  %v40_v27 = vld [vmem:[%s3301_s1 + $0x50] sm:$0xff]  ;;  %v2430_v36 = vmov 1065369472  }
  0x14   :  { %1934 = vmatmul.mubr.msk.bf16.vlgmr.msra.gmra.mrb[0].mxu0 %vm73_vm0, %v47_v19  ;;  %v50_v26 = vpack.c.bf16 %v39_v24, %v38_v23  ;;  %v41_v28 = vld [vmem:[%s3301_s1 + $0x58] sm:$0xff]  ;;  %v42_v29 = vld [vmem:[%s3301_s1 + $0x60] sm:$0xff]  ;;  %v43_v30 = vld [vmem:[%s3301_s1 + $0x68] sm:$0xff]  ;;  %213 = vst.msk [vmem:[#allocation2 + $0x8] sm:$0xff] %vm211_vm1, %v2430_v36 }
  0x15   :  { %1937 = vmatprep.mubr.msk.bf16.mxu0 %vm73_vm0, %v48_v20  ;;  %v51_v31 = vpack.c.bf16 %v41_v28, %v40_v27  ;;  %v52_v32 = vpack.c.bf16 %v43_v30, %v42_v29  ;;  %v44_v33 = vld [vmem:[%s3301_s1 + $0x70] sm:$0xff]  ;;  %v45_v34 = vld [vmem:[%s3301_s1 + $0x78] sm:$0xff]  ;;  %212 = vst.msk [vmem:[#allocation2] sm:$0xff] %vm211_vm1, %v2430_v36  ;;  %214 = vst.msk [vmem:[#allocation2 + $0x10] sm:$0xff] %vm211_vm1, %v2430_v36 }
  0x16   :  { %v53_v35 = vpack.c.bf16 %v45_v34, %v44_v33  ;;  %215 = vst.msk [vmem:[#allocation2 + $0x18] sm:$0xff] %vm211_vm1, %v2430_v36  ;;  %216 = vst.msk [vmem:[#allocation2 + $0x20] sm:$0xff] %vm211_vm1, %v2430_v36  ;;  %v2558_v37 = vld [vmem:[%s3304_s4] ss:$0 sm:$0xff] }
  0x17   :  { %217 = vst.msk [vmem:[#allocation2 + $0x28] sm:$0xff] %vm211_vm1, %v2430_v36  ;;  %218 = vst.msk [vmem:[#allocation2 + $0x30] sm:$0xff] %vm211_vm1, %v2430_v36 }
  0x18   :  { %219 = vst.msk [vmem:[#allocation2 + $0x38] sm:$0xff] %vm211_vm1, %v2430_v36 }
  0x1c   :  { %1938 = vmatmul.mubr.msk.bf16.gmra.mrb[4].mxu0 %vm73_vm0, %v49_v25 }
  0x1d   :  { %1941 = vmatprep.mubr.msk.bf16.mxu0 %vm73_vm0, %v50_v26 }
  0x24   :  { %1942 = vmatmul.mubr.msk.bf16.gmra.mrb[8].mxu0 %vm73_vm0, %v51_v31 }
  0x25   :  { %1945 = vmatprep.mubr.msk.bf16.mxu0 %vm73_vm0, %v52_v32 }
  0x2c   :  { %1946 = vmatmul.mubr.msk.bf16.gmra.mrb[12].mxu0 %vm73_vm0, %v53_v35 }
  0xe7   :  { %v1935_v38 = vpop.f32.mrb[0].mxu0 }
  0xe8   :  { %v141_v39 = vadd.f32 %v1935_v38, %v2558_v37  ;;  %v132_v40 = vpop.f32.mrb[1].mxu0 }
  0xe9   :  { %v133_v41 = vadd.f32 %v2558_v37, %v132_v40  ;;  %v1936_v42 = vpop.f32.mrb[2].mxu0 }
  0xea   :  { %v2562_v43 = vmax.f32 %v141_v39, 0.0  ;;  %v144_v44 = vadd.f32 %v1936_v42, %v2558_v37  ;;  %v135_v45 = vpop.f32.mrb[3].mxu0 }
  0xeb   :  { %v2565_v46 = vmax.f32 %v133_v41, 0.0  ;;  %v136_v47 = vadd.f32 %v2558_v37, %v135_v45 }
  0xec   :  { %v2568_v48 = vmax.f32 %v144_v44, 0.0  ;;  %v222_v49 = vmul.f32 %v2562_v43, %v2562_v43 }
  0xed   :  { %v2572_v50 = vmax.f32 %v136_v47, 0.0  ;;  %v220_v51 = vmul.f32 %v2565_v46, %v2565_v46 }
  0xee   :  { %v575_v52 = vpack.c.bf16 %v2568_v48, %v2562_v43  ;;  %v243_v53 = vsel %vm236_vm2, %v222_v49, 0.0  ;;  %v223_v54 = vmul.f32 %v2568_v48, %v2568_v48 }
  0xef   :  { %v574_v55 = vpack.c.bf16 %v2572_v50, %v2565_v46  ;;  %244 = vadd.xlane.f32.xlu1 %v243_v53  ;;  %v1939_v56 = vpop.f32.mrb[4].mxu0  ;;  %v237_v57 = vsel %vm236_vm2, %v220_v51, 0.0  ;;  %v221_v58 = vmul.f32 %v2572_v50, %v2572_v50 }
  0xf0   :  { %583 = vst.msk [vmem:[#allocation2 + $0x8] sm:$0xff] %vm236_vm2, %v575_v52  ;;  %v157_v59 = vadd.f32 %v1939_v56, %v2558_v37  ;;  %v148_v60 = vpop.f32.mrb[5].mxu0  ;;  %238 = vadd.xlane.f32.xlu0 %v237_v57  ;;  %v246_v2 = vsel %vm236_vm2, %v223_v54, 0.0 }
  0xf1   :  { %582 = vst.msk [vmem:[#allocation2] sm:$0xff] %vm236_vm2, %v574_v55  ;;  %v149_v61 = vadd.f32 %v2558_v37, %v148_v60  ;;  %v1940_v62 = vpop.f32.mrb[6].mxu0  ;;  %v240_v5 = vsel %vm236_vm2, %v221_v58, 0.0 }
  0xf2   :  { %v2590_v63 = vmax.f32 %v157_v59, 0.0  ;;  %v160_v0 = vadd.f32 %v1940_v62, %v2558_v37  ;;  %v151_v1 = vpop.f32.mrb[7].mxu0 }
  0xf3   :  { %v2594_v3 = vmax.f32 %v149_v61, 0.0  ;;  %v152_v4 = vadd.f32 %v2558_v37, %v151_v1  ;;  %247 = vadd.xlane.f32.xlu1 %v246_v2 }
  0xf4   :  { %v2598_v6 = vmax.f32 %v160_v0, 0.0  ;;  %241 = vadd.xlane.f32.xlu0 %v240_v5  ;;  %v226_v9 = vmul.f32 %v2590_v63, %v2590_v63 }
  0xf5   :  { %v2600_v7 = vmax.f32 %v152_v4, 0.0  ;;  %v224_v8 = vmul.f32 %v2594_v3, %v2594_v3 }
  0xf6   :  { %v577_v10 = vpack.c.bf16 %v2598_v6, %v2590_v63  ;;  %v227_v15 = vmul.f32 %v2598_v6, %v2598_v6  ;;  %v255_v22 = vsel %vm236_vm2, %v226_v9, 0.0 }
  0xf7   :  { %v576_v11 = vpack.c.bf16 %v2600_v7, %v2594_v3  ;;  %v1943_v12 = vpop.f32.mrb[8].mxu0  ;;  %v249_v13 = vsel %vm236_vm2, %v224_v8, 0.0  ;;  %v225_v14 = vmul.f32 %v2600_v7, %v2600_v7  ;;  %v591_v26 = vld [vmem:[#allocation2 + $0x8] sm:$0xff] }
  0xf8   :  { %585 = vst.msk [vmem:[#allocation2 + $0x18] sm:$0xff] %vm236_vm2, %v577_v10  ;;  %v173_v16 = vadd.f32 %v1943_v12, %v2558_v37  ;;  %v164_v17 = vpop.f32.mrb[9].mxu0  ;;  %250 = vadd.xlane.f32.xlu0 %v249_v13  ;;  %v590_v18 = vld [vmem:[#allocation2] sm:$0xff]  ;;  %v258_v29 = vsel %vm236_vm2, %v227_v15, 0.0 }
  0xf9   :  { %584 = vst.msk [vmem:[#allocation2 + $0x10] sm:$0xff] %vm236_vm2, %v576_v11  ;;  %v165_v19 = vadd.f32 %v2558_v37, %v164_v17  ;;  %v1944_v20 = vpop.f32.mrb[10].mxu0  ;;  %1981 = vmatprep.subr.bf16.mxu0 %v590_v18  ;;  %v252_v21 = vsel %vm236_vm2, %v225_v14, 0.0 }
  0xfa   :  { %v2621_v23 = vmax.f32 %v173_v16, 0.0  ;;  %v176_v24 = vadd.f32 %v1944_v20, %v2558_v37  ;;  %v167_v25 = vpop.f32.mrb[11].mxu0  ;;  %253 = vadd.xlane.f32.xlu1 %v252_v21  ;;  %1982 = vmatpush3.bf16.msra.mxu0 %v590_v18 }
  0xfb   :  { %v2624_v27 = vmax.f32 %v165_v19, 0.0  ;;  %v168_v28 = vadd.f32 %v2558_v37, %v167_v25  ;;  %1983 = vmatprep.subr.bf16.mxu0 %v591_v26 }
  0xfc   :  { %v2628_v30 = vmax.f32 %v176_v24, 0.0  ;;  %256 = vadd.xlane.f32.xlu0 %v255_v22  ;;  %v230_v33 = vmul.f32 %v2621_v23, %v2621_v23 }
  0xfd   :  { %v2630_v31 = vmax.f32 %v168_v28, 0.0  ;;  %v228_v32 = vmul.f32 %v2624_v27, %v2624_v27 }
  0xfe   :  { %v579_v34 = vpack.c.bf16 %v2628_v30, %v2621_v23  ;;  %259 = vadd.xlane.f32.xlu1 %v258_v29  ;;  %1984 = vmatpush3.bf16.msra.mxu0 %v591_v26  ;;  %v231_v40 = vmul.f32 %v2628_v30, %v2628_v30  ;;  %v267_v52 = vsel %vm236_vm2, %v230_v33, 0.0 }
  0xff   :  { %v578_v35 = vpack.c.bf16 %v2630_v31, %v2624_v27  ;;  %v1947_v36 = vpop.f32.mrb[12].mxu0  ;;  %v261_v38 = vsel %vm236_vm2, %v228_v32, 0.0  ;;  %v229_v39 = vmul.f32 %v2630_v31, %v2630_v31  ;;  %v593_v45 = vld [vmem:[#allocation2 + $0x18] sm:$0xff] }
 0x100   :  { %587 = vst.msk [vmem:[#allocation2 + $0x28] sm:$0xff] %vm236_vm2, %v579_v34  ;;  %v189_v41 = vadd.f32 %v1947_v36, %v2558_v37  ;;  %v180_v42 = vpop.f32.mrb[13].mxu0  ;;  %262 = vadd.xlane.f32.xlu0 %v261_v38  ;;  %v592_v44 = vld [vmem:[#allocation2 + $0x10] sm:$0xff]  ;;  %v270_v58 = vsel %vm236_vm2, %v231_v40, 0.0 }
 0x101   :  { %586 = vst.msk [vmem:[#allocation2 + $0x20] sm:$0xff] %vm236_vm2, %v578_v35  ;;  %v181_v47 = vadd.f32 %v2558_v37, %v180_v42  ;;  %v1948_v49 = vpop.f32.mrb[14].mxu0  ;;  %v264_v51 = vsel %vm236_vm2, %v229_v39, 0.0  ;;  %1985 = vmatprep.subr.bf16.mxu0 %v592_v44 }
 0x102   :  { %v2651_v53 = vmax.f32 %v189_v41, 0.0  ;;  %v192_v54 = vadd.f32 %v1948_v49, %v2558_v37  ;;  %v183_v55 = vpop.f32.mrb[15].mxu0  ;;  %265 = vadd.xlane.f32.xlu1 %v264_v51  ;;  %1986 = vmatpush3.bf16.msra.mxu0 %v592_v44 }
 0x103   :  { %v2654_v56 = vmax.f32 %v181_v47, 0.0  ;;  %v184_v57 = vadd.f32 %v2558_v37, %v183_v55  ;;  %1987 = vmatprep.subr.bf16.mxu0 %v593_v45 }
 0x104   :  { %v2658_v59 = vmax.f32 %v192_v54, 0.0  ;;  %268 = vadd.xlane.f32.xlu0 %v267_v52  ;;  %v234_v62 = vmul.f32 %v2651_v53, %v2651_v53 }
 0x105   :  { %v2660_v60 = vmax.f32 %v184_v57, 0.0  ;;  %v232_v61 = vmul.f32 %v2654_v56, %v2654_v56 }
 0x106   :  { %v581_v0 = vpack.c.bf16 %v2658_v59, %v2651_v53  ;;  %271 = vadd.xlane.f32.xlu1 %v270_v58  ;;  %1988 = vmatpush3.bf16.msra.mxu0 %v593_v45  ;;  %v235_v4 = vmul.f32 %v2658_v59, %v2658_v59  ;;  %v279_v10 = vsel %vm236_vm2, %v234_v62, 0.0 }
 0x107   :  { %v580_v37 = vpack.c.bf16 %v2660_v60, %v2654_v56  ;;  %v273_v1 = vsel %vm236_vm2, %v232_v61, 0.0  ;;  %v233_v2 = vmul.f32 %v2660_v60, %v2660_v60  ;;  %v595_v8 = vld [vmem:[#allocation2 + $0x28] sm:$0xff] }
 0x108   :  { %589 = vst.msk [vmem:[#allocation2 + $0x38] sm:$0xff] %vm236_vm2, %v581_v0  ;;  %274 = vadd.xlane.f32.xlu0 %v273_v1  ;;  %v594_v5 = vld [vmem:[#allocation2 + $0x20] sm:$0xff]  ;;  %v282_v11 = vsel %vm236_vm2, %v235_v4, 0.0 }
 0x109   :  { %588 = vst.msk [vmem:[#allocation2 + $0x30] sm:$0xff] %vm236_vm2, %v580_v37  ;;  %v276_v9 = vsel %vm236_vm2, %v233_v2, 0.0  ;;  %1989 = vmatprep.subr.bf16.mxu0 %v594_v5 }
 0x10a   :  { %277 = vadd.xlane.f32.xlu1 %v276_v9  ;;  %1990 = vmatpush3.bf16.msra.mxu0 %v594_v5 }
 0x10b   :  { %1991 = vmatprep.subr.bf16.mxu0 %v595_v8 }
 0x10c   :  { %280 = vadd.xlane.f32.xlu0 %v279_v10 }
 0x10e   :  { %283 = vadd.xlane.f32.xlu1 %v282_v11  ;;  %1992 = vmatpush3.bf16.msra.mxu0 %v595_v8 }
 0x10f   :  { %v597_v13 = vld [vmem:[#allocation2 + $0x38] sm:$0xff] }
 0x110   :  { %v596_v12 = vld [vmem:[#allocation2 + $0x30] sm:$0xff] }
 0x111   :  { %1993 = vmatprep.subr.bf16.mxu0 %v596_v12 }
 0x112   :  { %1994 = vmatpush3.bf16.msra.mxu0 %v596_v12 }
 0x113   :  { %1995 = vmatprep.subr.bf16.mxu0 %v597_v13 }
 0x116   :  { %1996 = vmatpush3.bf16.msra.mxu0 %v597_v13 }
 0x17c   :  { %v245_v14 = vpop.xlane.xlu1 %244 }
 0x17d   :  { %v287_v15 = vmax.f32 %v245_v14, 1e-24  ;;  %v239_v16 = vpop.xlane.xlu0 %238 }
 0x17e   :  { %v285_v17 = vmax.f32 %v239_v16, 1e-24 }
 0x17f   :  { %2150 = vrsqrt.f32 %v287_v15 }
 0x180   :  { %v248_v18 = vpop.xlane.xlu1 %247  ;;  %2152 = vrsqrt.f32 %v285_v17 }
 0x181   :  { %v288_v19 = vmax.f32 %v248_v18, 1e-24  ;;  %v242_v20 = vpop.xlane.xlu0 %241 }
 0x182   :  { %v286_v21 = vmax.f32 %v242_v20, 1e-24 }
 0x183   :  { %2154 = vrsqrt.f32 %v288_v19 }
 0x184   :  { %2156 = vrsqrt.f32 %v286_v21 }
 0x185   :  { %v251_v22 = vpop.xlane.xlu0 %250 }
 0x186   :  { %v289_v25 = vmax.f32 %v251_v22, 1e-24 }
 0x187   :  { %v254_v24 = vpop.xlane.xlu1 %253 }
 0x188   :  { %v290_v26 = vmax.f32 %v254_v24, 1e-24 }
 0x189   :  { %v2151_v28 = vpop.eup %2150  ;;  %v257_v34 = vpop.xlane.xlu0 %256 }
 0x18a   :  { %2158 = vrsqrt.f32 %v290_v26  ;;  %v2153_v32 = vpop.eup %2152  ;;  %v291_v41 = vmax.f32 %v257_v34, 1e-24  ;;  %v319_v44 = vmul.f32 %v2151_v28, %v2562_v43 }
 0x18b   :  { %v260_v29 = vpop.xlane.xlu1 %259  ;;  %2160 = vrsqrt.f32 %v289_v25  ;;  %v317_v38 = vmul.f32 %v2153_v32, %v2565_v46 }
 0x18c   :  { %v292_v36 = vmax.f32 %v260_v29, 1e-24 }
 0x18d   :  { %v2155_v33 = vpop.eup %2154  ;;  %v263_v46 = vpop.xlane.xlu0 %262 }
 0x18e   :  { %v2157_v35 = vpop.eup %2156  ;;  %v320_v40 = vmul.f32 %v2155_v33, %v2568_v48  ;;  %2162 = vrsqrt.f32 %v292_v36  ;;  %v293_v52 = vmax.f32 %v263_v46, 1e-24 }
 0x18f   :  { %v318_v39 = vmul.f32 %v2157_v35, %v2572_v50  ;;  %v266_v45 = vpop.xlane.xlu1 %265  ;;  %2164 = vrsqrt.f32 %v291_v41 }
 0x190   :  { %v2687_v49 = vpack.c.bf16 %v320_v40, %v319_v44  ;;  %v294_v50 = vmax.f32 %v266_v45, 1e-24 }
 0x191   :  { %v333_v42 = vpack.c.bf16 %v318_v39, %v317_v38  ;;  %v269_v62 = vpop.xlane.xlu0 %268 }
 0x192   :  { %2166 = vrsqrt.f32 %v294_v50  ;;  %v345_v57 = vsel %vm236_vm2, %v2687_v49, 0  ;;  %v295_v1 = vmax.f32 %v269_v62, 1e-24  ;;  %v2135_v62 = vld [vmem:[%s3302_s2 + $0x8] sm:$0xff]  }
 0x193   :  { %2111 = vmatprep.subr.msk.bf16.mxu1 %vm236_vm2, %v333_v42  ;;  %1965 = vmatprep.mubr.msk.bf16.mxu1 %vm236_vm2, %v333_v42  ;;  %v342_v47 = vsel %vm236_vm2, %v333_v42, 0  ;;  %v272_v55 = vpop.xlane.xlu1 %271  ;;  %2168 = vrsqrt.f32 %v293_v52 }
 0x194   :  { %v2159_v51 = vpop.eup %2158  ;;  %1950 = vmatpush3.bf16.xpose.msra.mxu1 %v342_v47  ;;  %v296_v37 = vmax.f32 %v272_v55, 1e-24  ;;  %v2134_v55 = vld [vmem:[%s3302_s2] sm:$0xff]  }
 0x195   :  { %2112 = vmatprep.subr.msk.bf16.mxu1 %vm236_vm2, %v2687_v49  ;;  %v2161_v48 = vpop.eup %2160  ;;  %v322_v43 = vmul.f32 %v2159_v51, %v2600_v7  ;;  %v275_v9 = vpop.xlane.xlu0 %274 }
 0x196   :  { %v321_v54 = vmul.f32 %v2161_v48, %v2594_v3  ;;  %2170 = vrsqrt.f32 %v296_v37 }
 0x197   :  { %v278_v2 = vpop.xlane.xlu1 %277  ;;  %2172 = vrsqrt.f32 %v295_v1 }
 0x198   :  { %v2695_v58 = vpack.c.bf16 %v322_v43, %v321_v54  ;;  %v2163_v61 = vpop.eup %2162  ;;  %v298_v11 = vmax.f32 %v278_v2, 1e-24 }
 0x199   :  { %v2165_v0 = vpop.eup %2164  ;;  %v324_v7 = vmul.f32 %v2163_v61, %v2598_v6  ;;  %v297_v6 = vmax.f32 %v275_v9, 1e-24  ;;  %v281_v17 = vpop.xlane.xlu0 %280 }
 0x19a   :  { %v323_v3 = vmul.f32 %v2165_v0, %v2590_v63  ;;  %v348_v4 = vsel %vm236_vm2, %v2695_v58, 0  ;;  %2174 = vrsqrt.f32 %v298_v11  ;;  %v299_v21 = vmax.f32 %v281_v17, 1e-24 }
 0x19b   :  { %v284_v63 = vpop.xlane.xlu1 %283  ;;  %2176 = vrsqrt.f32 %v297_v6  ;;  %v2136_v6 = vld [vmem:[%s3302_s2 + $0x10] sm:$0xff]  }
 0x19c   :  { %1952 = vmatpush3.bf16.xpose.msra.mxu1 %v345_v57  ;;  %v336_v5 = vpack.c.bf16 %v324_v7, %v323_v3  ;;  %v2167_v8 = vpop.eup %2166  ;;  %v300_v19 = vmax.f32 %v284_v63, 1e-24 }
 0x19d   :  { %2113 = vmatprep.subr.msk.bf16.mxu1 %vm236_vm2, %v2695_v58  ;;  %v2169_v10 = vpop.eup %2168  ;;  %v326_v12 = vmul.f32 %v2167_v8, %v2630_v31 }
 0x19e   :  { %v325_v13 = vmul.f32 %v2169_v10, %v2624_v27  ;;  %v351_v14 = vsel %vm236_vm2, %v336_v5, 0  ;;  %2178 = vrsqrt.f32 %v300_v19 }
 0x19f   :  { %2180 = vrsqrt.f32 %v299_v21 }
 0x1a0   :  { %v337_v15 = vpack.c.bf16 %v326_v12, %v325_v13  ;;  %v2171_v16 = vpop.eup %2170 }
 0x1a1   :  { %v2173_v18 = vpop.eup %2172  ;;  %v328_v20 = vmul.f32 %v2171_v16, %v2628_v30 }
 0x1a2   :  { %v327_v31 = vmul.f32 %v2173_v18, %v2621_v23  ;;  %v354_v27 = vsel %vm236_vm2, %v337_v15, 0 }
 0x1a4   :  { %1954 = vmatpush3.bf16.xpose.msra.mxu1 %v348_v4  ;;  %v338_v22 = vpack.c.bf16 %v328_v20, %v327_v31  ;;  %v2175_v24 = vpop.eup %2174 }
 0x1a5   :  { %2114 = vmatprep.subr.msk.bf16.mxu1 %vm236_vm2, %v336_v5  ;;  %v2177_v25 = vpop.eup %2176  ;;  %v330_v26 = vmul.f32 %v2175_v24, %v2660_v60 }
 0x1a6   :  { %v329_v28 = vmul.f32 %v2177_v25, %v2654_v56  ;;  %v357_v29 = vsel %vm236_vm2, %v338_v22, 0 }
 0x1a8   :  { %v339_v30 = vpack.c.bf16 %v330_v26, %v329_v28  ;;  %v2179_v32 = vpop.eup %2178 }
 0x1a9   :  { %v2181_v23 = vpop.eup %2180  ;;  %v332_v33 = vmul.f32 %v2179_v32, %v2658_v59 }
 0x1aa   :  { %v331_v34 = vmul.f32 %v2181_v23, %v2651_v53  ;;  %v360_v35 = vsel %vm236_vm2, %v339_v30, 0  ;;  %v2139_v23 = vld [vmem:[%s3302_s2 + $0x28] sm:$0xff]  }
 0x1ac   :  { %1956 = vmatpush3.bf16.xpose.msra.mxu1 %v351_v14  ;;  %v340_v36 = vpack.c.bf16 %v332_v33, %v331_v34 }
 0x1ad   :  { %2115 = vmatprep.subr.msk.bf16.mxu1 %vm236_vm2, %v337_v15 }
 0x1ae   :  { %v363_v56 = vsel %vm236_vm2, %v340_v36, 0 }
 0x1b4   :  { %1958 = vmatpush3.bf16.xpose.msra.mxu1 %v354_v27 }
 0x1b5   :  { %2116 = vmatprep.subr.msk.bf16.mxu1 %vm236_vm2, %v338_v22 }
 0x1bc   :  { %1960 = vmatpush3.bf16.xpose.msra.mxu1 %v357_v29  ;;  %v2138_v29 = vld [vmem:[%s3302_s2 + $0x20] sm:$0xff]  }
 0x1bd   :  { %2117 = vmatprep.subr.msk.bf16.mxu1 %vm236_vm2, %v339_v30 }
 0x1c4   :  { %1962 = vmatpush3.bf16.xpose.msra.mxu1 %v360_v35 }
 0x1c5   :  { %2118 = vmatprep.subr.msk.bf16.mxu1 %vm236_vm2, %v340_v36 }
 0x1cc   :  { %1964 = vmatpush3.bf16.xpose.msra.mxu1 %v363_v56 }
 0x1d3   :  { %1966 = vmatmul.mubr.msk.bf16.vlgmr.msra.gmra.mrb[0].mxu1 %vm236_vm2, %v2687_v49 }
 0x1d4   :  { %1969 = vmatprep.mubr.msk.bf16.mxu1 %vm236_vm2, %v2695_v58 }
 0x1db   :  { %1970 = vmatmul.mubr.msk.bf16.gmra.mrb[4].mxu1 %vm236_vm2, %v336_v5 }
 0x1dc   :  { %1973 = vmatprep.mubr.msk.bf16.mxu1 %vm236_vm2, %v337_v15  ;;  %v2137_v15 = vld [vmem:[%s3302_s2 + $0x18] sm:$0xff]  }
 0x1e3   :  { %1974 = vmatmul.mubr.msk.bf16.gmra.mrb[8].mxu1 %vm236_vm2, %v338_v22 }
 0x1e4   :  { %1977 = vmatprep.mubr.msk.bf16.mxu1 %vm236_vm2, %v339_v30 }
 0x1eb   :  { %1978 = vmatmul.mubr.msk.bf16.gmra.mrb[12].mxu1 %vm236_vm2, %v340_v36 }
 0x2a6   :  { %v1967_v53 = vpop.f32.mrb[0].mxu1 }
 0x2a7   :  { %v466_v59 = vmul.f32 1.442695, %v1967_v53  ;;  %v399_v60 = vpop.f32.mrb[1].mxu1 }
 0x2a8   :  { %v462_v38 = vmul.f32 1.442695, %v399_v60  ;;  %v1968_v39 = vpop.f32.mrb[2].mxu1 }
 0x2a9   :  { %2182 = vpow2.f32 %v466_v59  ;;  %v468_v40 = vmul.f32 1.442695, %v1968_v39  ;;  %v402_v41 = vpop.f32.mrb[3].mxu1  ;;  %v2140_v59 = vld [vmem:[%s3302_s2 + $0x30] sm:$0xff]   ;;  %v2141_v39 = vld [vmem:[%s3302_s2 + $0x38] sm:$0xff]  }
 0x2aa   :  { %2184 = vpow2.f32 %v462_v38  ;;  %v464_v42 = vmul.f32 1.442695, %v402_v41 }
 0x2ab   :  { %2186 = vpow2.f32 %v468_v40 }
 0x2ac   :  { %2188 = vpow2.f32 %v464_v42 }
 0x2ae   :  { %v1971_v44 = vpop.f32.mrb[4].mxu1 }
 0x2af   :  { %v474_v45 = vmul.f32 1.442695, %v1971_v44  ;;  %v415_v47 = vpop.f32.mrb[5].mxu1  ;;  %v2431_v44 = vmov 16  }
 0x2b0   :  { %v470_v49 = vmul.f32 1.442695, %v415_v47  ;;  %v1972_v51 = vpop.f32.mrb[6].mxu1  ;;  %2132 = vset.pattern.permute.xlu0 %v2431_v44  ;;  %2133 = vset.pattern.permute.xlu1 %v2431_v44 }
 0x2b1   :  { %2190 = vpow2.f32 %v474_v45  ;;  %v476_v46 = vmul.f32 1.442695, %v1972_v51  ;;  %v418_v48 = vpop.f32.mrb[7].mxu1 }
 0x2b2   :  { %2192 = vpow2.f32 %v470_v49  ;;  %v472_v50 = vmul.f32 1.442695, %v418_v48 }
 0x2b3   :  { %v2183_v43 = vpop.eup %2182  ;;  %2194 = vpow2.f32 %v476_v46 }
 0x2b4   :  { %v2185_v52 = vpop.eup %2184  ;;  %2196 = vpow2.f32 %v472_v50 }
 0x2b5   :  { %v2187_v54 = vpop.eup %2186 }
 0x2b6   :  { %v2189_v57 = vpop.eup %2188  ;;  %v495_v58 = vpack.c.bf16 %v2187_v54, %v2183_v43  ;;  %v1975_v61 = vpop.f32.mrb[8].mxu1 }
 0x2b7   :  { %v482_v0 = vmul.f32 1.442695, %v1975_v61  ;;  %v431_v37 = vpop.f32.mrb[9].mxu1  ;;  %v494_v7 = vpack.c.bf16 %v2189_v57, %v2185_v52 }
 0x2b8   :  { %v478_v1 = vmul.f32 1.442695, %v431_v37  ;;  %v1976_v3 = vpop.f32.mrb[10].mxu1  ;;  %v567_v9 = vmul.bf16 %v2135_v62, %v495_v58 }
 0x2b9   :  { %2198 = vpow2.f32 %v482_v0  ;;  %v484_v2 = vmul.f32 1.442695, %v1976_v3  ;;  %v434_v4 = vpop.f32.mrb[11].mxu1  ;;  %v566_v5 = vmul.bf16 %v2134_v55, %v494_v7 }
 0x2ba   :  { %2200 = vpow2.f32 %v478_v1  ;;  %v480_v8 = vmul.f32 1.442695, %v434_v4 }
 0x2bb   :  { %v2191_v10 = vpop.eup %2190  ;;  %2202 = vpow2.f32 %v484_v2  ;;  %1997 = vmatprep.mubr.bf16.mxu0 %v566_v5 }
 0x2bc   :  { %v2193_v11 = vpop.eup %2192  ;;  %2204 = vpow2.f32 %v480_v8  ;;  %1998 = vmatmul.mubr.bf16.vlgmr.msra.gmra.mrb[16].mxu0 %v567_v9 }
 0x2bd   :  { %v2195_v12 = vpop.eup %2194 }
 0x2be   :  { %v2197_v13 = vpop.eup %2196  ;;  %v1979_v63 = vpop.f32.mrb[12].mxu1  ;;  %v497_v14 = vpack.c.bf16 %v2195_v12, %v2191_v10 }
 0x2bf   :  { %v490_v16 = vmul.f32 1.442695, %v1979_v63  ;;  %v447_v17 = vpop.f32.mrb[13].mxu1  ;;  %v496_v18 = vpack.c.bf16 %v2197_v13, %v2193_v11 }
 0x2c0   :  { %v486_v19 = vmul.f32 1.442695, %v447_v17  ;;  %v1980_v20 = vpop.f32.mrb[14].mxu1  ;;  %v569_v24 = vmul.bf16 %v2137_v15, %v497_v14 }
 0x2c1   :  { %2206 = vpow2.f32 %v490_v16  ;;  %v492_v21 = vmul.f32 1.442695, %v1980_v20  ;;  %v450_v31 = vpop.f32.mrb[15].mxu1  ;;  %v568_v27 = vmul.bf16 %v2136_v6, %v496_v18 }
 0x2c2   :  { %2208 = vpow2.f32 %v486_v19  ;;  %v488_v22 = vmul.f32 1.442695, %v450_v31 }
 0x2c3   :  { %v2199_v25 = vpop.eup %2198  ;;  %2210 = vpow2.f32 %v492_v21  ;;  %2001 = vmatprep.mubr.bf16.mxu0 %v568_v27 }
 0x2c4   :  { %v2201_v26 = vpop.eup %2200  ;;  %2212 = vpow2.f32 %v488_v22  ;;  %2002 = vmatmul.mubr.bf16.gmra.mrb[20].mxu0 %v569_v24 }
 0x2c5   :  { %v2203_v28 = vpop.eup %2202 }
 0x2c6   :  { %v2205_v30 = vpop.eup %2204  ;;  %v499_v32 = vpack.c.bf16 %v2203_v28, %v2199_v25 }
 0x2c7   :  { %v498_v33 = vpack.c.bf16 %v2205_v30, %v2201_v26 }
 0x2c8   :  { %v571_v35 = vmul.bf16 %v2139_v23, %v499_v32 }
 0x2c9   :  { %v570_v34 = vmul.bf16 %v2138_v29, %v498_v33 }
 0x2cb   :  { %v2207_v36 = vpop.eup %2206  ;;  %2005 = vmatprep.mubr.bf16.mxu0 %v570_v34 }
 0x2cc   :  { %v2209_v56 = vpop.eup %2208  ;;  %2006 = vmatmul.mubr.bf16.gmra.mrb[24].mxu0 %v571_v35 }
 0x2cd   :  { %v2211_v53 = vpop.eup %2210 }
 0x2ce   :  { %v2213_v60 = vpop.eup %2212  ;;  %v501_v38 = vpack.c.bf16 %v2211_v53, %v2207_v36 }
 0x2cf   :  { %v500_v40 = vpack.c.bf16 %v2213_v60, %v2209_v56 }
 0x2d0   :  { %v573_v42 = vmul.bf16 %v2141_v39, %v501_v38 }
 0x2d1   :  { %v572_v41 = vmul.bf16 %v2140_v59, %v500_v40 }
 0x2d3   :  { %2009 = vmatprep.mubr.bf16.mxu0 %v572_v41 }
 0x2d4   :  { %2010 = vmatmul.mubr.bf16.gmra.mrb[28].mxu0 %v573_v42 }
 0x38f   :  { %v2754_v45 = vpop.f32.mrb[16].mxu0 }
 0x390   :  { %v2756_v47 = vpop.f32.mrb[17].mxu0 }
 0x391   :  { %2214 = vrcp.f32 %v2756_v47  ;;  %v2759_v49 = vpop.f32.mrb[18].mxu0 }
 0x392   :  { %v2761_v51 = vpop.f32.mrb[19].mxu0 }
 0x393   :  { %2216 = vrcp.f32 %v2761_v51 }
 0x394   :  { %2218 = vrcp.f32 %v2754_v45 }
 0x395   :  { %2220 = vrcp.f32 %v2759_v49 }
 0x397   :  { %v2765_v46 = vpop.f32.mrb[20].mxu0 }
 0x398   :  { %v2767_v48 = vpop.f32.mrb[21].mxu0 }
 0x399   :  { %v2769_v50 = vpop.f32.mrb[22].mxu0  ;;  %2222 = vrcp.f32 %v2767_v48 }
 0x39a   :  { %v2771_v43 = vpop.f32.mrb[23].mxu0 }
 0x39b   :  { %v2215_v52 = vpop.eup %2214  ;;  %2224 = vrcp.f32 %v2771_v43 }
 0x39c   :  { %713 = vperm.xlu0 %2132, %v2215_v52  }
 0x39d   :  { %v2217_v54 = vpop.eup %2216 }
 0x39e   :  { %718 = vperm.xlu1 %2133, %v2217_v54   ;;  %v2219_v58 = vpop.eup %2218 }
 0x39f   :  { %v2775_v55 = vpop.f32.mrb[24].mxu0  ;;  %v2221_v0 = vpop.eup %2220 }
 0x3a0   :  { %v2777_v57 = vpop.f32.mrb[25].mxu0 }
 0x3a1   :  { %v2779_v61 = vpop.f32.mrb[26].mxu0 }
 0x3a2   :  { %723 = vperm.xlu1 %2133, %v2219_v58   ;;  %v2782_v62 = vpop.f32.mrb[27].mxu0 }
 0x3a3   :  { %2226 = vrcp.f32 %v2782_v62  ;;  %v2223_v1 = vpop.eup %2222 }
 0x3a4   :  { %2228 = vrcp.f32 %v2765_v46 }
 0x3a5   :  { %2230 = vrcp.f32 %v2779_v61  ;;  %v2225_v4 = vpop.eup %2224 }
 0x3a6   :  { %728 = vperm.xlu1 %2133, %v2221_v0  }
 0x3a7   :  { %v2787_v37 = vpop.f32.mrb[28].mxu0 }
 0x3a8   :  { %v2789_v7 = vpop.f32.mrb[29].mxu0 }
 0x3a9   :  { %v2791_v3 = vpop.f32.mrb[30].mxu0 }
 0x3aa   :  { %2232 = vrcp.f32 %v2791_v3  ;;  %733 = vperm.xlu1 %2133, %v2223_v1   ;;  %v2794_v2 = vpop.f32.mrb[31].mxu0 }
 0x3ab   :  { %2234 = vrcp.f32 %v2769_v50 }
 0x3ac   :  { %2236 = vrcp.f32 %v2777_v57 }
 0x3ad   :  { %v2227_v5 = vpop.eup %2226  ;;  %2238 = vrcp.f32 %v2794_v2 }
 0x3ae   :  { %738 = vperm.xlu1 %2133, %v2225_v4   ;;  %758 = vperm.xlu0 %2132, %v2227_v5   ;;  %v2229_v8 = vpop.eup %2228  ;;  %2240 = vrcp.f32 %v2775_v55 }
 0x3af   :  { %v2231_v9 = vpop.eup %2230  ;;  %2242 = vrcp.f32 %v2789_v7 }
 0x3b0   :  { %2244 = vrcp.f32 %v2787_v37 }
 0x3b2   :  { %743 = vperm.xlu1 %2133, %v2229_v8   ;;  %768 = vperm.xlu0 %2132, %v2231_v9  }
 0x3b4   :  { %v2233_v10 = vpop.eup %2232 }
 0x3b5   :  { %v2235_v11 = vpop.eup %2234 }
 0x3b6   :  { %748 = vperm.xlu1 %2133, %v2235_v11   ;;  %788 = vperm.xlu0 %2132, %v2233_v10   ;;  %v2237_v12 = vpop.eup %2236 }
 0x3b7   :  { %v2239_v6 = vpop.eup %2238 }
 0x3b8   :  { %v2241_v13 = vpop.eup %2240 }
 0x3b9   :  { %v2243_v63 = vpop.eup %2242 }
 0x3ba   :  { %753 = vperm.xlu1 %2133, %v2237_v12   ;;  %778 = vperm.xlu0 %2132, %v2239_v6   ;;  %v2245_v14 = vpop.eup %2244 }
 0x3be   :  { %763 = vperm.xlu1 %2133, %v2241_v13  }
 0x3c2   :  { %773 = vperm.xlu1 %2133, %v2243_v63  }
 0x3c6   :  { %783 = vperm.xlu1 %2133, %v2245_v14  }
 0x41b   :  { %v714_v15 = vpop.permute.xlu0 %713 }
 0x41c   :  { %v2803_v16 = vmul.f32 %v714_v15, %v2756_v47 }
 0x41d   :  { %v719_v17 = vpop.permute.xlu1 %718 }
 0x41e   :  { %v2806_v18 = vmul.f32 %v719_v17, %v2761_v51  ;;  %v808_v19 = vmul.f32 %v2803_v16, %v2803_v16 }
 0x420   :  { %v1210_v20 = vpack.c.bf16 %v2806_v18, %v2803_v16  ;;  %v824_v21 = vsel %vm236_vm2, %v808_v19, 0.0  ;;  %v809_v31 = vmul.f32 %v2806_v18, %v2806_v18 }
 0x421   :  { %v724_v27 = vpop.permute.xlu1 %723  ;;  %825 = vadd.xlane.f32.xlu1 %v824_v21 }
 0x422   :  { %1218 = vst.msk [vmem:[#allocation2] sm:$0xff] %vm236_vm2, %v1210_v20  ;;  %v2817_v22 = vmul.f32 %v2754_v45, %v724_v27  ;;  %v827_v24 = vsel %vm236_vm2, %v809_v31, 0.0 }
 0x423   :  { %828 = vadd.xlane.f32.xlu0 %v827_v24 }
 0x424   :  { %v810_v25 = vmul.f32 %v2817_v22, %v2817_v22 }
 0x425   :  { %v729_v26 = vpop.permute.xlu1 %728 }
 0x426   :  { %v2823_v28 = vmul.f32 %v2759_v49, %v729_v26  ;;  %v830_v29 = vsel %vm236_vm2, %v810_v25, 0.0 }
 0x427   :  { %831 = vadd.xlane.f32.xlu0 %v830_v29 }
 0x428   :  { %v1211_v30 = vpack.c.bf16 %v2823_v28, %v2817_v22  ;;  %v811_v32 = vmul.f32 %v2823_v28, %v2823_v28 }
 0x429   :  { %v734_v23 = vpop.permute.xlu1 %733  ;;  %v2830_v33 = vld [vmem:[#allocation2] sm:$0xff] }
 0x42a   :  { %1219 = vst.msk [vmem:[#allocation2 + $0x8] sm:$0xff] %vm236_vm2, %v1211_v30  ;;  %v2834_v34 = vmul.f32 %v734_v23, %v2767_v48  ;;  %2095 = vmatprep.subr.bf16.mxu1 %v2830_v33  ;;  %v833_v35 = vsel %vm236_vm2, %v811_v32, 0.0 }
 0x42b   :  { %2103 = vmatpush3.bf16.msra.mxu1 %v2830_v33  ;;  %834 = vadd.xlane.f32.xlu1 %v833_v35 }
 0x42c   :  { %v812_v36 = vmul.f32 %v2834_v34, %v2834_v34 }
 0x42d   :  { %v739_v56 = vpop.permute.xlu1 %738  ;;  %v759_v53 = vpop.permute.xlu0 %758 }
 0x42e   :  { %v2842_v59 = vmul.f32 %v739_v56, %v2771_v43  ;;  %v836_v60 = vsel %vm236_vm2, %v812_v36, 0.0  ;;  %v2861_v49 = vmul.f32 %v759_v53, %v2782_v62 }
 0x42f   :  { %837 = vadd.xlane.f32.xlu0 %v836_v60 }
 0x430   :  { %v1212_v38 = vpack.c.bf16 %v2842_v59, %v2834_v34  ;;  %v813_v39 = vmul.f32 %v2842_v59, %v2842_v59  ;;  %v817_v62 = vmul.f32 %v2861_v49, %v2861_v49 }
 0x431   :  { %v744_v40 = vpop.permute.xlu1 %743  ;;  %v769_v41 = vpop.permute.xlu0 %768  ;;  %v2849_v42 = vld [vmem:[#allocation2 + $0x8] sm:$0xff] }
 0x432   :  { %1220 = vst.msk [vmem:[#allocation2 + $0x10] sm:$0xff] %vm236_vm2, %v1212_v38  ;;  %v2853_v44 = vmul.f32 %v2765_v46, %v744_v40  ;;  %2096 = vmatprep.subr.bf16.mxu1 %v2849_v42  ;;  %v839_v45 = vsel %vm236_vm2, %v813_v39, 0.0  ;;  %v2876_v1 = vmul.f32 %v2779_v61, %v769_v41  ;;  %v851_v10 = vsel %vm236_vm2, %v817_v62, 0.0 }
 0x433   :  { %2104 = vmatpush3.bf16.msra.mxu1 %v2849_v42  ;;  %840 = vadd.xlane.f32.xlu1 %v839_v45 }
 0x434   :  { %v814_v47 = vmul.f32 %v2853_v44, %v2853_v44  ;;  %v819_v6 = vmul.f32 %v2876_v1, %v2876_v1 }
 0x435   :  { %v749_v51 = vpop.permute.xlu1 %748  ;;  %v789_v48 = vpop.permute.xlu0 %788 }
 0x436   :  { %v2864_v43 = vmul.f32 %v2769_v50, %v749_v51  ;;  %v842_v46 = vsel %vm236_vm2, %v814_v47, 0.0  ;;  %v2905_v14 = vmul.f32 %v2791_v3, %v789_v48  ;;  %v857_v17 = vsel %vm236_vm2, %v819_v6, 0.0 }
 0x437   :  { %843 = vadd.xlane.f32.xlu0 %v842_v46 }
 0x438   :  { %v1213_v52 = vpack.c.bf16 %v2864_v43, %v2853_v44  ;;  %v815_v54 = vmul.f32 %v2864_v43, %v2864_v43  ;;  %v823_v26 = vmul.f32 %v2905_v14, %v2905_v14 }
 0x439   :  { %v754_v58 = vpop.permute.xlu1 %753  ;;  %v2871_v0 = vld [vmem:[#allocation2 + $0x10] sm:$0xff]  ;;  %v779_v5 = vpop.permute.xlu0 %778 }
 0x43a   :  { %1221 = vst.msk [vmem:[#allocation2 + $0x18] sm:$0xff] %vm236_vm2, %v1213_v52  ;;  %v2880_v50 = vmul.f32 %v754_v58, %v2777_v57  ;;  %2097 = vmatprep.subr.bf16.mxu1 %v2871_v0  ;;  %v845_v4 = vsel %vm236_vm2, %v815_v54, 0.0  ;;  %v2892_v57 = vmul.f32 %v779_v5, %v2794_v2  ;;  %v869_v23 = vsel %vm236_vm2, %v823_v26, 0.0 }
 0x43b   :  { %2105 = vmatpush3.bf16.msra.mxu1 %v2871_v0  ;;  %846 = vadd.xlane.f32.xlu1 %v845_v4  ;;  %v2958_v54 = vstv %s3300_s0 }
 0x43c   :  { %v1214_v8 = vpack.c.bf16 %v2861_v49, %v2880_v50  ;;  %v816_v61 = vmul.f32 %v2880_v50, %v2880_v50  ;;  %v821_v20 = vmul.f32 %v2892_v57, %v2892_v57 }
 0x43d   :  { %v764_v9 = vpop.permute.xlu1 %763 }
 0x43e   :  { %1222 = vst.msk [vmem:[#allocation2 + $0x20] sm:$0xff] %vm236_vm2, %v1214_v8  ;;  %v2895_v11 = vmul.f32 %v2775_v55, %v764_v9  ;;  %v848_v12 = vsel %vm236_vm2, %v816_v61, 0.0  ;;  %v863_v25 = vsel %vm236_vm2, %v821_v20, 0.0 }
 0x43f   :  { %852 = vadd.xlane.f32.xlu1 %v851_v10  ;;  %849 = vadd.xlane.f32.xlu0 %v848_v12 }
 0x440   :  { %v1215_v13 = vpack.c.bf16 %v2876_v1, %v2895_v11  ;;  %v818_v63 = vmul.f32 %v2895_v11, %v2895_v11 }
 0x441   :  { %v774_v2 = vpop.permute.xlu1 %773  ;;  %v2907_v15 = vld [vmem:[#allocation2 + $0x18] sm:$0xff] }
 0x442   :  { %1223 = vst.msk [vmem:[#allocation2 + $0x28] sm:$0xff] %vm236_vm2, %v1215_v13  ;;  %v2911_v55 = vmul.f32 %v774_v2, %v2789_v7  ;;  %2098 = vmatprep.subr.bf16.mxu1 %v2907_v15  ;;  %v854_v19 = vsel %vm236_vm2, %v818_v63, 0.0 }
 0x443   :  { %2106 = vmatpush3.bf16.msra.mxu1 %v2907_v15  ;;  %858 = vadd.xlane.f32.xlu1 %v857_v17 }
 0x444   :  { %v1216_v3 = vpack.c.bf16 %v2892_v57, %v2911_v55  ;;  %855 = vadd.xlane.f32.xlu0 %v854_v19  ;;  %v820_v7 = vmul.f32 %v2911_v55, %v2911_v55 }
 0x445   :  { %v784_v21 = vpop.permute.xlu1 %783  ;;  %v2923_v31 = vld [vmem:[#allocation2 + $0x20] sm:$0xff] }
 0x446   :  { %1224 = vst.msk [vmem:[#allocation2 + $0x30] sm:$0xff] %vm236_vm2, %v1216_v3  ;;  %v2927_v27 = vmul.f32 %v2787_v37, %v784_v21  ;;  %2099 = vmatprep.subr.bf16.mxu1 %v2923_v31  ;;  %v860_v24 = vsel %vm236_vm2, %v820_v7, 0.0 }
 0x447   :  { %2107 = vmatpush3.bf16.msra.mxu1 %v2923_v31  ;;  %864 = vadd.xlane.f32.xlu1 %v863_v25 }
 0x448   :  { %v1217_v29 = vpack.c.bf16 %v2905_v14, %v2927_v27  ;;  %861 = vadd.xlane.f32.xlu0 %v860_v24  ;;  %v822_v37 = vmul.f32 %v2927_v27, %v2927_v27 }
 0x449   :  { %v2939_v30 = vld [vmem:[#allocation2 + $0x28] sm:$0xff] }
 0x44a   :  { %1225 = vst.msk [vmem:[#allocation2 + $0x38] sm:$0xff] %vm236_vm2, %v1217_v29  ;;  %2100 = vmatprep.subr.bf16.mxu1 %v2939_v30  ;;  %v866_v32 = vsel %vm236_vm2, %v822_v37, 0.0 }
 0x44b   :  { %2108 = vmatpush3.bf16.msra.mxu1 %v2939_v30  ;;  %870 = vadd.xlane.f32.xlu1 %v869_v23 }
 0x44c   :  { %867 = vadd.xlane.f32.xlu0 %v866_v32 }
 0x44d   :  { %v2946_v35 = vld [vmem:[#allocation2 + $0x30] sm:$0xff] }
 0x44e   :  { %2101 = vmatprep.subr.bf16.mxu1 %v2946_v35 }
 0x44f   :  { %2109 = vmatpush3.bf16.msra.mxu1 %v2946_v35 }
 0x451   :  { %v2950_v36 = vld [vmem:[#allocation2 + $0x38] sm:$0xff] }
 0x452   :  { %2102 = vmatprep.subr.bf16.mxu1 %v2950_v36 }
 0x453   :  { %2110 = vmatpush3.bf16.msra.mxu1 %v2950_v36 }
 0x4ae   :  { %v826_v56 = vpop.xlane.xlu1 %825 }
 0x4af   :  { %v872_v53 = vmax.f32 %v826_v56, 1e-24 }
 0x4b0   :  { %v829_v60 = vpop.xlane.xlu0 %828 }
 0x4b1   :  { %2246 = vrsqrt.f32 %v872_v53  ;;  %v873_v38 = vmax.f32 %v829_v60, 1e-24 }
 0x4b3   :  { %2248 = vrsqrt.f32 %v873_v38 }
 0x4b4   :  { %v832_v39 = vpop.xlane.xlu0 %831 }
 0x4b5   :  { %v874_v40 = vmax.f32 %v832_v39, 1e-24 }
 0x4b7   :  { %2250 = vrsqrt.f32 %v874_v40 }
 0x4b8   :  { %v835_v41 = vpop.xlane.xlu1 %834 }
 0x4b9   :  { %v875_v45 = vmax.f32 %v835_v41, 1e-24 }
 0x4bb   :  { %v2247_v47 = vpop.eup %2246  ;;  %2252 = vrsqrt.f32 %v875_v45 }
 0x4bc   :  { %v838_v51 = vpop.xlane.xlu0 %837  ;;  %v904_v48 = vmul.f32 %v2247_v47, %v2803_v16 }
 0x4bd   :  { %v2249_v46 = vpop.eup %2248  ;;  %v876_v52 = vmax.f32 %v838_v51, 1e-24 }
 0x4be   :  { %v905_v58 = vmul.f32 %v2249_v46, %v2806_v18  ;;  %v921_v5 = vmul.f32 %v2958_v54, %v904_v48 }
 0x4bf   :  { %2254 = vrsqrt.f32 %v876_v52 }
 0x4c0   :  { %v841_v62 = vpop.xlane.xlu1 %840  ;;  %v945_v4 = vpack.c.bf16 %v905_v58, %v904_v48  ;;  %v922_v8 = vmul.f32 %v2958_v54, %v905_v58 }
 0x4c1   :  { %v877_v61 = vmax.f32 %v841_v62, 1e-24  ;;  %v2251_v10 = vpop.eup %2250 }
 0x4c2   :  { %2119 = vmatprep.subr.msk.bf16.mxu0 %vm236_vm2, %v945_v4  ;;  %v978_v16 = vsel %vm236_vm2, %v945_v4, 0  ;;  %v937_v9 = vpack.c.bf16 %v922_v8, %v921_v5  ;;  %v2967_v13 = vmul.f32 %v2251_v10, %v2817_v22 }
 0x4c3   :  { %2256 = vrsqrt.f32 %v877_v61  ;;  %2014 = vmatpush3.bf16.xpose.msra.mxu0 %v978_v16 }
 0x4c4   :  { %2029 = vmatprep.mubr.msk.bf16.mxu0 %vm236_vm2, %v937_v9  ;;  %v844_v12 = vpop.xlane.xlu0 %843 }
 0x4c5   :  { %v2253_v18 = vpop.eup %2252  ;;  %v878_v6 = vmax.f32 %v844_v12, 1e-24 }
 0x4c6   :  { %v2970_v63 = vmul.f32 %v2253_v18, %v2823_v28 }
 0x4c7   :  { %2258 = vrsqrt.f32 %v878_v6 }
 0x4c8   :  { %v847_v2 = vpop.xlane.xlu1 %846  ;;  %v946_v17 = vpack.c.bf16 %v2970_v63, %v2967_v13 }
 0x4c9   :  { %v879_v19 = vmax.f32 %v847_v2, 1e-24  ;;  %v2255_v3 = vpop.eup %2254 }
 0x4ca   :  { %2120 = vmatprep.subr.msk.bf16.mxu0 %vm236_vm2, %v946_v17  ;;  %v981_v20 = vsel %vm236_vm2, %v946_v17, 0  ;;  %v2977_v28 = vmul.f32 %v2255_v3, %v2834_v34 }
 0x4cb   :  { %2260 = vrsqrt.f32 %v879_v19  ;;  %2016 = vmatpush3.bf16.xpose.msra.mxu0 %v981_v20 }
 0x4cc   :  { %v853_v7 = vpop.xlane.xlu1 %852  ;;  %v850_v21 = vpop.xlane.xlu0 %849 }
 0x4cd   :  { %v2257_v22 = vpop.eup %2256  ;;  %v881_v24 = vmax.f32 %v853_v7, 1e-24  ;;  %v880_v25 = vmax.f32 %v850_v21, 1e-24 }
 0x4ce   :  { %v2980_v26 = vmul.f32 %v2257_v22, %v2842_v59 }
 0x4cf   :  { %2262 = vrsqrt.f32 %v881_v24 }
 0x4d0   :  { %2264 = vrsqrt.f32 %v880_v25  ;;  %v859_v29 = vpop.xlane.xlu1 %858  ;;  %v947_v37 = vpack.c.bf16 %v2980_v26, %v2977_v28  ;;  %v926_v21 = vmul.f32 %v2958_v54, %v2980_v26 }
 0x4d1   :  { %v883_v32 = vmax.f32 %v859_v29, 1e-24  ;;  %v856_v23 = vpop.xlane.xlu0 %855  ;;  %v2259_v60 = vpop.eup %2258 }
 0x4d2   :  { %v882_v56 = vmax.f32 %v856_v23, 1e-24  ;;  %2121 = vmatprep.subr.msk.bf16.mxu0 %vm236_vm2, %v947_v37  ;;  %v984_v53 = vsel %vm236_vm2, %v947_v37, 0  ;;  %v910_v41 = vmul.f32 %v2259_v60, %v2853_v44 }
 0x4d3   :  { %2266 = vrsqrt.f32 %v883_v32  ;;  %2018 = vmatpush3.bf16.xpose.msra.mxu0 %v984_v53 }
 0x4d4   :  { %2268 = vrsqrt.f32 %v882_v56  ;;  %v865_v34 = vpop.xlane.xlu1 %864 }
 0x4d5   :  { %v2261_v59 = vpop.eup %2260  ;;  %v885_v38 = vmax.f32 %v865_v34, 1e-24  ;;  %v862_v39 = vpop.xlane.xlu0 %861 }
 0x4d6   :  { %v884_v40 = vmax.f32 %v862_v39, 1e-24  ;;  %v911_v45 = vmul.f32 %v2261_v59, %v2864_v43 }
 0x4d7   :  { %2270 = vrsqrt.f32 %v885_v38 }
 0x4d8   :  { %v948_v47 = vpack.c.bf16 %v911_v45, %v910_v41  ;;  %2272 = vrsqrt.f32 %v884_v40  ;;  %v871_v48 = vpop.xlane.xlu1 %870 }
 0x4d9   :  { %v2263_v51 = vpop.eup %2262  ;;  %v868_v52 = vpop.xlane.xlu0 %867  ;;  %v887_v5 = vmax.f32 %v871_v48, 1e-24 }
 0x4da   :  { %v2265_v46 = vpop.eup %2264  ;;  %2122 = vmatprep.subr.msk.bf16.mxu0 %vm236_vm2, %v948_v47  ;;  %v987_v58 = vsel %vm236_vm2, %v948_v47, 0  ;;  %v913_v62 = vmul.f32 %v2263_v51, %v2861_v49  ;;  %v886_v8 = vmax.f32 %v868_v52, 1e-24 }
 0x4db   :  { %2020 = vmatpush3.bf16.xpose.msra.mxu0 %v987_v58  ;;  %v912_v4 = vmul.f32 %v2265_v46, %v2880_v50  ;;  %2274 = vrsqrt.f32 %v887_v5 }
 0x4dc   :  { %2276 = vrsqrt.f32 %v886_v8  ;;  %v930_v26 = vmul.f32 %v2958_v54, %v913_v62  ;;  %v2143_v8 = vld [vmem:[%s3302_s2 + $0x8] sm:$0xff]  }
 0x4dd   :  { %v2267_v44 = vpop.eup %2266  ;;  %v949_v43 = vpack.c.bf16 %v913_v62, %v912_v4  ;;  %v929_v25 = vmul.f32 %v2958_v54, %v912_v4  ;;  %v2142_v62 = vld [vmem:[%s3302_s2] sm:$0xff]  }
 0x4de   :  { %v2269_v61 = vpop.eup %2268  ;;  %v915_v16 = vmul.f32 %v2267_v44, %v2876_v1 }
 0x4df   :  { %2123 = vmatprep.subr.msk.bf16.mxu0 %vm236_vm2, %v949_v43  ;;  %v914_v9 = vmul.f32 %v2269_v61, %v2895_v11  ;;  %v990_v12 = vsel %vm236_vm2, %v949_v43, 0  ;;  %v941_v29 = vpack.c.bf16 %v930_v26, %v929_v25 }
 0x4e0   :  { %v932_v37 = vmul.f32 %v2958_v54, %v915_v16 }
 0x4e1   :  { %v2271_v10 = vpop.eup %2270  ;;  %v950_v49 = vpack.c.bf16 %v915_v16, %v914_v9 }
 0x4e2   :  { %v2273_v18 = vpop.eup %2272  ;;  %v917_v6 = vmul.f32 %v2271_v10, %v2892_v57 }
 0x4e3   :  { %2022 = vmatpush3.bf16.xpose.msra.mxu0 %v990_v12  ;;  %v916_v50 = vmul.f32 %v2273_v18, %v2911_v55  ;;  %v993_v1 = vsel %vm236_vm2, %v950_v49, 0  ;;  %v924_v55 = vmul.f32 %v2958_v54, %v2970_v63  ;;  %v928_v63 = vmul.f32 %v2958_v54, %v911_v45 }
 0x4e4   :  { %2124 = vmatprep.subr.msk.bf16.mxu0 %vm236_vm2, %v950_v49 }
 0x4e5   :  { %v2275_v2 = vpop.eup %2274  ;;  %v951_v17 = vpack.c.bf16 %v917_v6, %v916_v50  ;;  %v933_v32 = vmul.f32 %v2958_v54, %v916_v50 }
 0x4e6   :  { %v2277_v19 = vpop.eup %2276  ;;  %v919_v20 = vmul.f32 %v2275_v2, %v2905_v14  ;;  %v923_v14 = vmul.f32 %v2958_v54, %v2967_v13  ;;  %v927_v13 = vmul.f32 %v2958_v54, %v910_v41 }
 0x4e7   :  { %v918_v11 = vmul.f32 %v2277_v19, %v2927_v27  ;;  %v996_v3 = vsel %vm236_vm2, %v951_v17, 0  ;;  %v925_v27 = vmul.f32 %v2958_v54, %v2977_v28  ;;  %v2144_v19 = vld [vmem:[%s3302_s2 + $0x10] sm:$0xff]  }
 0x4e8   :  { %v938_v22 = vpack.c.bf16 %v924_v55, %v923_v14  ;;  %v940_v28 = vpack.c.bf16 %v928_v63, %v927_v13  ;;  %v936_v53 = vmul.f32 %v2958_v54, %v919_v20 }
 0x4e9   :  { %v952_v7 = vpack.c.bf16 %v919_v20, %v918_v11  ;;  %v939_v24 = vpack.c.bf16 %v926_v21, %v925_v27 }
 0x4eb   :  { %2024 = vmatpush3.bf16.xpose.msra.mxu0 %v993_v1  ;;  %v999_v57 = vsel %vm236_vm2, %v952_v7, 0 }
 0x4ec   :  { %2125 = vmatprep.subr.msk.bf16.mxu0 %vm236_vm2, %v951_v17 }
 0x4f3   :  { %2026 = vmatpush3.bf16.xpose.msra.mxu0 %v996_v3 }
 0x4f4   :  { %2126 = vmatprep.subr.msk.bf16.mxu0 %vm236_vm2, %v952_v7  ;;  %v2145_v7 = vld [vmem:[%s3302_s2 + $0x18] sm:$0xff]  }
 0x4fb   :  { %2028 = vmatpush3.bf16.xpose.msra.mxu0 %v999_v57 }
 0x4fc   :  { %2045 = vmatprep.subr.bf16.mxu0 %v2830_v33 }
 0x502   :  { %2030 = vmatmul.mubr.msk.bf16.vlgmr.msra.gmra.mrb[32].mxu0 %vm236_vm2, %v938_v22 }
 0x503   :  { %2033 = vmatprep.mubr.msk.bf16.mxu0 %vm236_vm2, %v939_v24  ;;  %2046 = vmatpush3.bf16.msra.mxu0 %v2830_v33  ;;  %v931_v33 = vmul.f32 %v2958_v54, %v914_v9 }
 0x504   :  { %2047 = vmatprep.subr.bf16.mxu0 %v2849_v42 }
 0x505   :  { %v942_v23 = vpack.c.bf16 %v932_v37, %v931_v33  ;;  %v2146_v33 = vld [vmem:[%s3302_s2 + $0x20] sm:$0xff]  }
 0x507   :  { %2048 = vmatpush3.bf16.msra.mxu0 %v2849_v42  ;;  %v934_v42 = vmul.f32 %v2958_v54, %v917_v6 }
 0x508   :  { %2049 = vmatprep.subr.bf16.mxu0 %v2871_v0 }
 0x509   :  { %v943_v56 = vpack.c.bf16 %v934_v42, %v933_v32  ;;  %v2147_v42 = vld [vmem:[%s3302_s2 + $0x28] sm:$0xff]  }
 0x50a   :  { %2034 = vmatmul.mubr.msk.bf16.gmra.mrb[36].mxu0 %vm236_vm2, %v940_v28 }
 0x50b   :  { %2037 = vmatprep.mubr.msk.bf16.mxu0 %vm236_vm2, %v941_v29  ;;  %2050 = vmatpush3.bf16.msra.mxu0 %v2871_v0  ;;  %v935_v0 = vmul.f32 %v2958_v54, %v918_v11 }
 0x50c   :  { %2051 = vmatprep.subr.bf16.mxu0 %v2907_v15 }
 0x50f   :  { %2052 = vmatpush3.bf16.msra.mxu0 %v2907_v15  ;;  %v944_v15 = vpack.c.bf16 %v936_v53, %v935_v0 }
 0x510   :  { %2053 = vmatprep.subr.bf16.mxu0 %v2923_v31 }
 0x512   :  { %2038 = vmatmul.mubr.msk.bf16.gmra.mrb[40].mxu0 %vm236_vm2, %v942_v23 }
 0x513   :  { %2041 = vmatprep.mubr.msk.bf16.mxu0 %vm236_vm2, %v943_v56  ;;  %2054 = vmatpush3.bf16.msra.mxu0 %v2923_v31 }
 0x514   :  { %2055 = vmatprep.subr.bf16.mxu0 %v2939_v30 }
 0x517   :  { %2056 = vmatpush3.bf16.msra.mxu0 %v2939_v30 }
 0x518   :  { %2057 = vmatprep.subr.bf16.mxu0 %v2946_v35 }
 0x51a   :  { %2042 = vmatmul.mubr.msk.bf16.gmra.mrb[44].mxu0 %vm236_vm2, %v944_v15 }
 0x51b   :  { %2058 = vmatpush3.bf16.msra.mxu0 %v2946_v35 }
 0x51c   :  { %2059 = vmatprep.subr.bf16.mxu0 %v2950_v36 }
 0x51f   :  { %2060 = vmatpush3.bf16.msra.mxu0 %v2950_v36 }
 0x5d5   :  { %v2031_v31 = vpop.f32.mrb[32].mxu0 }
 0x5d6   :  { %v1102_v60 = vmul.f32 1.442695, %v2031_v31  ;;  %v1035_v34 = vpop.f32.mrb[33].mxu0 }
 0x5d7   :  { %v1098_v59 = vmul.f32 1.442695, %v1035_v34  ;;  %v2032_v38 = vpop.f32.mrb[34].mxu0 }
 0x5d8   :  { %2278 = vpow2.f32 %v1102_v60  ;;  %v1104_v54 = vmul.f32 1.442695, %v2032_v38  ;;  %v1038_v39 = vpop.f32.mrb[35].mxu0  ;;  %v2148_v60 = vld [vmem:[%s3302_s2 + $0x30] sm:$0xff]   ;;  %v2149_v38 = vld [vmem:[%s3302_s2 + $0x38] sm:$0xff]  }
 0x5d9   :  { %2280 = vpow2.f32 %v1098_v59  ;;  %v1100_v30 = vmul.f32 1.442695, %v1038_v39 }
 0x5da   :  { %2282 = vpow2.f32 %v1104_v54 }
 0x5db   :  { %2284 = vpow2.f32 %v1100_v30 }
 0x5dd   :  { %v2035_v40 = vpop.f32.mrb[36].mxu0 }
 0x5de   :  { %v1110_v41 = vmul.f32 1.442695, %v2035_v40  ;;  %v1051_v45 = vpop.f32.mrb[37].mxu0  ;;  %v1451_v40 = vld [vmem:[%s3305_s5] sm:$0xff] }
 0x5df   :  { %v1106_v35 = vmul.f32 1.442695, %v1051_v45  ;;  %v2036_v47 = vpop.f32.mrb[38].mxu0 }
 0x5e0   :  { %2286 = vpow2.f32 %v1110_v41  ;;  %v1112_v51 = vmul.f32 1.442695, %v2036_v47  ;;  %v1054_v36 = vpop.f32.mrb[39].mxu0  ;;  %v1452_v41 = vld [vmem:[%s3305_s5 + $0x8] sm:$0xff] }
 0x5e1   :  { %2288 = vpow2.f32 %v1106_v35  ;;  %v1108_v48 = vmul.f32 1.442695, %v1054_v36  ;;  %v1453_v45 = vpack.c.bf16 %v1452_v41, %v1451_v40 }
 0x5e2   :  { %v2279_v46 = vpop.eup %2278  ;;  %2290 = vpow2.f32 %v1112_v51 }
 0x5e3   :  { %v2281_v52 = vpop.eup %2280  ;;  %2292 = vpow2.f32 %v1108_v48  ;;  %2077 = vmatprep.subr.bf16.mxu1 %v1453_v45 }
 0x5e4   :  { %v2283_v58 = vpop.eup %2282 }
 0x5e5   :  { %v2285_v4 = vpop.eup %2284  ;;  %v1131_v5 = vpack.c.bf16 %v2283_v58, %v2279_v46  ;;  %v2039_v44 = vpop.f32.mrb[40].mxu0 }
 0x5e6   :  { %v1118_v43 = vmul.f32 1.442695, %v2039_v44  ;;  %v1067_v61 = vpop.f32.mrb[41].mxu0  ;;  %v1130_v16 = vpack.c.bf16 %v2285_v4, %v2281_v52 }
 0x5e7   :  { %v1114_v9 = vmul.f32 1.442695, %v1067_v61  ;;  %v2040_v10 = vpop.f32.mrb[42].mxu0  ;;  %v1203_v6 = vmul.bf16 %v2143_v8, %v1131_v5 }
 0x5e8   :  { %2294 = vpow2.f32 %v1118_v43  ;;  %v1120_v12 = vmul.f32 1.442695, %v2040_v10  ;;  %v1070_v49 = vpop.f32.mrb[43].mxu0  ;;  %v1202_v18 = vmul.bf16 %v2142_v62, %v1130_v16 }
 0x5e9   :  { %2296 = vpow2.f32 %v1114_v9  ;;  %v1116_v50 = vmul.f32 1.442695, %v1070_v49 }
 0x5ea   :  { %v2287_v2 = vpop.eup %2286  ;;  %2298 = vpow2.f32 %v1120_v12  ;;  %2061 = vmatprep.mubr.bf16.mxu0 %v1202_v18 }
 0x5eb   :  { %v2289_v1 = vpop.eup %2288  ;;  %2300 = vpow2.f32 %v1116_v50  ;;  %2062 = vmatmul.mubr.bf16.vlgmr.msra.gmra.mrb[48].mxu0 %v1203_v6 }
 0x5ec   :  { %v2291_v17 = vpop.eup %2290 }
 0x5ed   :  { %v2293_v11 = vpop.eup %2292  ;;  %v1133_v20 = vpack.c.bf16 %v2291_v17, %v2287_v2  ;;  %v2043_v3 = vpop.f32.mrb[44].mxu0 }
 0x5ee   :  { %v1126_v57 = vmul.f32 1.442695, %v2043_v3  ;;  %v1083_v55 = vpop.f32.mrb[45].mxu0  ;;  %v1132_v21 = vpack.c.bf16 %v2293_v11, %v2289_v1 }
 0x5ef   :  { %v1122_v14 = vmul.f32 1.442695, %v1083_v55  ;;  %v2044_v27 = vpop.f32.mrb[46].mxu0  ;;  %v1205_v26 = vmul.bf16 %v2145_v7, %v1133_v20 }
 0x5f0   :  { %2302 = vpow2.f32 %v1126_v57  ;;  %v1128_v22 = vmul.f32 1.442695, %v2044_v27  ;;  %v1086_v24 = vpop.f32.mrb[47].mxu0  ;;  %v1204_v63 = vmul.bf16 %v2144_v19, %v1132_v21 }
 0x5f1   :  { %2304 = vpow2.f32 %v1122_v14  ;;  %v1124_v25 = vmul.f32 1.442695, %v1086_v24 }
 0x5f2   :  { %v2295_v13 = vpop.eup %2294  ;;  %2306 = vpow2.f32 %v1128_v22  ;;  %2065 = vmatprep.mubr.bf16.mxu1 %v1204_v63 }
 0x5f3   :  { %v2297_v28 = vpop.eup %2296  ;;  %2308 = vpow2.f32 %v1124_v25  ;;  %2066 = vmatmul.mubr.bf16.vlgmr.msra.gmra.mrb[16].mxu1 %v1205_v26 }
 0x5f4   :  { %v2299_v29 = vpop.eup %2298  ;;  %2078 = vmatpush3.bf16.msra.mxu1 %v1453_v45 }
 0x5f5   :  { %v2301_v37 = vpop.eup %2300  ;;  %v1135_v32 = vpack.c.bf16 %v2299_v29, %v2295_v13 }
 0x5f6   :  { %v1134_v23 = vpack.c.bf16 %v2301_v37, %v2297_v28 }
 0x5f7   :  { %v1207_v0 = vmul.bf16 %v2147_v42, %v1135_v32 }
 0x5f8   :  { %v1206_v56 = vmul.bf16 %v2146_v33, %v1134_v23 }
 0x5fa   :  { %v2303_v53 = vpop.eup %2302  ;;  %2069 = vmatprep.mubr.bf16.mxu1 %v1206_v56 }
 0x5fb   :  { %v2305_v15 = vpop.eup %2304  ;;  %2070 = vmatmul.mubr.bf16.gmra.mrb[20].mxu1 %v1207_v0 }
 0x5fc   :  { %v2307_v31 = vpop.eup %2306 }
 0x5fd   :  { %v2309_v34 = vpop.eup %2308  ;;  %v1137_v59 = vpack.c.bf16 %v2307_v31, %v2303_v53 }
 0x5fe   :  { %v1136_v54 = vpack.c.bf16 %v2309_v34, %v2305_v15 }
 0x5ff   :  { %v1209_v30 = vmul.bf16 %v2149_v38, %v1137_v59 }
 0x600   :  { %v1208_v39 = vmul.bf16 %v2148_v60, %v1136_v54 }
 0x602   :  { %2073 = vmatprep.mubr.bf16.mxu1 %v1208_v39 }
 0x603   :  { %2074 = vmatmul.mubr.bf16.gmra.mrb[24].mxu1 %v1209_v30 }
 0x6be   :  { %v3077_v35 = vpop.f32.mrb[48].mxu0 }
 0x6bf   :  { %v3079_v47 = vpop.f32.mrb[49].mxu0 }
 0x6c0   :  { %2310 = vrcp.f32 %v3079_v47  ;;  %v3082_v51 = vpop.f32.mrb[50].mxu0 }
 0x6c1   :  { %v3084_v36 = vpop.f32.mrb[51].mxu0 }
 0x6c2   :  { %2312 = vrcp.f32 %v3084_v36 }
 0x6c3   :  { %2314 = vrcp.f32 %v3082_v51 }
 0x6c4   :  { %2316 = vrcp.f32 %v3077_v35 }
 0x6c6   :  { %v3089_v48 = vpop.f32.mrb[16].mxu1 }
 0x6c7   :  { %v3091_v46 = vpop.f32.mrb[17].mxu1 }
 0x6c8   :  { %v3093_v52 = vpop.f32.mrb[18].mxu1  ;;  %2318 = vrcp.f32 %v3091_v46 }
 0x6c9   :  { %v3096_v58 = vpop.f32.mrb[19].mxu1 }
 0x6ca   :  { %v2311_v62 = vpop.eup %2310  ;;  %2320 = vrcp.f32 %v3096_v58 }
 0x6cb   :  { %1349 = vperm.xlu0 %2132, %v2311_v62   ;;  %2322 = vrcp.f32 %v3089_v48  ;;  %v1831_v62 = vld [vmem:[%s3306_s6] ss:$0 sm:$0xff]  ;;  %s2432_s6 = smov [#allocation4]  }
 0x6cc   :  { %v2313_v4 = vpop.eup %2312  ;;  %2324 = vrcp.f32 %v3093_v52  ;;  %s1779_s12 = sshll.u32 %s2432_s6, 4  ;;  %s1780_s12 = int_to_ptr.vmem [resolvable:$true] %s1779_s12 }
 0x6cd   :  { %1354 = vperm.xlu1 %2133, %v2313_v4   ;;  %v2315_v5 = vpop.eup %2314  ;;  %s2406_s13 = scalar_lea.vmem %s1780_s12, 2048  ;;  %p2411_p1 = scmp.lt.s32.totalorder %s1780_s12, %s1780_s12 }
 0x6ce   :  { %v3101_v44 = vpop.f32.mrb[20].mxu1  ;;  %v2317_v43 = vpop.eup %2316  ;;  %p2407_p0 = scmp.ne.s32.totalorder %s1780_s12, %s2406_s13  ;;  %p2412_p2 = scmp.lt.s32.totalorder %s2406_s13, %s2406_s13 }
 0x6cf   :  { %v3103_v8 = vpop.f32.mrb[21].mxu1  ;;  %1364 = vperm.xlu0 %2132, %v2315_v5  }
 0x6d0   :  { %v3105_v61 = vpop.f32.mrb[22].mxu1  ;;  %2326 = vrcp.f32 %v3103_v8  ;;  %p2413_p3 = por %p2412_p2, %p2411_p1 }
 0x6d1   :  { %v1303_v16 = vpop.f32.mrb[23].mxu1  ;;  %1359 = vperm.xlu1 %2133, %v2317_v43  }
 0x6d2   :  { %2328 = vrcp.f32 %v1303_v16  ;;  %v2319_v9 = vpop.eup %2318  ;;  %p2414_p4 = pnand %p2413_p3, %p2407_p0 }
 0x6d3   :  { %2330 = vrcp.f32 %v3101_v44 }
 0x6d4   :  { %v2321_v10 = vpop.eup %2320  ;;  %2332 = vrcp.f32 %v3105_v61 }
 0x6d5   :  { %1374 = vperm.xlu0 %2132, %v2321_v10   ;;  %1369 = vperm.xlu1 %2133, %v2319_v9   ;;  %v2323_v49 = vpop.eup %2322 }
 0x6d6   :  { %v3110_v12 = vpop.f32.mrb[24].mxu1  ;;  %v2325_v50 = vpop.eup %2324 }
 0x6d7   :  { %v3112_v18 = vpop.f32.mrb[25].mxu1 }
 0x6d8   :  { %v3114_v6 = vpop.f32.mrb[26].mxu1  ;;  %2334 = vrcp.f32 %v3112_v18 }
 0x6d9   :  { %1384 = vperm.xlu0 %2132, %v2325_v50   ;;  %1379 = vperm.xlu1 %2133, %v2323_v49   ;;  %v1319_v2 = vpop.f32.mrb[27].mxu1 }
 0x6da   :  { %2336 = vrcp.f32 %v1319_v2  ;;  %v2327_v1 = vpop.eup %2326 }
 0x6db   :  { %2338 = vrcp.f32 %v3110_v12 }
 0x6dc   :  { %v2329_v17 = vpop.eup %2328  ;;  %2340 = vrcp.f32 %v3114_v6 }
 0x6dd   :  { %1394 = vperm.xlu0 %2132, %v2329_v17   ;;  %1389 = vperm.xlu1 %2133, %v2327_v1   ;;  %v2331_v19 = vpop.eup %2330 }
 0x6de   :  { %v2333_v11 = vpop.eup %2332 }
 0x6e1   :  { %1404 = vperm.xlu0 %2132, %v2333_v11   ;;  %1399 = vperm.xlu1 %2133, %v2331_v19  }
 0x6e2   :  { %v2335_v20 = vpop.eup %2334 }
 0x6e4   :  { %v2337_v3 = vpop.eup %2336 }
 0x6e5   :  { %1409 = vperm.xlu1 %2133, %v2335_v20   ;;  %1414 = vperm.xlu0 %2132, %v2337_v3   ;;  %v2339_v7 = vpop.eup %2338 }
 0x6e6   :  { %v2341_v57 = vpop.eup %2340 }
 0x6e9   :  { %1419 = vperm.xlu1 %2133, %v2339_v7   ;;  %1424 = vperm.xlu0 %2132, %v2341_v57  }
 0x74a   :  { %v1350_v55 = vpop.permute.xlu0 %1349 }
 0x74b   :  { %v1427_v14 = vmul.f32 %v1350_v55, %v3079_v47 }
 0x74c   :  { %v1355_v21 = vpop.permute.xlu1 %1354 }
 0x74d   :  { %v1428_v27 = vmul.f32 %v1355_v21, %v3084_v36 }
 0x74e   :  { %v1365_v22 = vpop.permute.xlu0 %1364 }
 0x74f   :  { %v1443_v24 = vpack.c.bf16 %v1428_v27, %v1427_v14  ;;  %v1430_v25 = vmul.f32 %v3082_v51, %v1365_v22 }
 0x750   :  { %v1360_v63 = vpop.permute.xlu1 %1359 }
 0x751   :  { %v1429_v26 = vmul.f32 %v3077_v35, %v1360_v63  ;;  %2079 = vmatprep.mubr.msk.bf16.mxu1 %vm236_vm2, %v1443_v24 }
 0x753   :  { %v1444_v13 = vpack.c.bf16 %v1430_v25, %v1429_v26 }
 0x754   :  { %v1375_v28 = vpop.permute.xlu0 %1374  ;;  %v1370_v29 = vpop.permute.xlu1 %1369 }
 0x755   :  { %v1432_v33 = vmul.f32 %v1375_v28, %v3096_v58  ;;  %v1431_v37 = vmul.f32 %v1370_v29, %v3091_v46  ;;  %2080 = vmatmul.mubr.msk.bf16.vlgmr.msra.gmra.mrb[28].mxu1 %vm236_vm2, %v1444_v13 }
 0x757   :  { %v1445_v32 = vpack.c.bf16 %v1432_v33, %v1431_v37 }
 0x758   :  { %v1385_v42 = vpop.permute.xlu0 %1384  ;;  %v1380_v23 = vpop.permute.xlu1 %1379 }
 0x759   :  { %v1434_v56 = vmul.f32 %v3093_v52, %v1385_v42  ;;  %v1433_v0 = vmul.f32 %v3089_v48, %v1380_v23  ;;  %2083 = vmatprep.mubr.msk.bf16.mxu1 %vm236_vm2, %v1445_v32 }
 0x75b   :  { %v1446_v53 = vpack.c.bf16 %v1434_v56, %v1433_v0 }
 0x75c   :  { %v1395_v15 = vpop.permute.xlu0 %1394  ;;  %v1390_v31 = vpop.permute.xlu1 %1389 }
 0x75d   :  { %v1436_v60 = vmul.f32 %v1395_v15, %v1303_v16  ;;  %v1435_v34 = vmul.f32 %v1390_v31, %v3103_v8  ;;  %2084 = vmatmul.mubr.msk.bf16.gmra.mrb[32].mxu1 %vm236_vm2, %v1446_v53 }
 0x75f   :  { %v1447_v59 = vpack.c.bf16 %v1436_v60, %v1435_v34 }
 0x760   :  { %v1405_v38 = vpop.permute.xlu0 %1404  ;;  %v1400_v54 = vpop.permute.xlu1 %1399 }
 0x761   :  { %v1438_v39 = vmul.f32 %v3105_v61, %v1405_v38  ;;  %v1437_v30 = vmul.f32 %v3101_v44, %v1400_v54  ;;  %2087 = vmatprep.mubr.msk.bf16.mxu1 %vm236_vm2, %v1447_v59 }
 0x763   :  { %v1448_v40 = vpack.c.bf16 %v1438_v39, %v1437_v30 }
 0x764   :  { %v1410_v41 = vpop.permute.xlu1 %1409  ;;  %v1415_v45 = vpop.permute.xlu0 %1414 }
 0x765   :  { %v1439_v35 = vmul.f32 %v1410_v41, %v3112_v18  ;;  %v1440_v47 = vmul.f32 %v1415_v45, %v1319_v2  ;;  %2088 = vmatmul.mubr.msk.bf16.gmra.mrb[36].mxu1 %vm236_vm2, %v1448_v40 }
 0x767   :  { %v1449_v51 = vpack.c.bf16 %v1440_v47, %v1439_v35 }
 0x768   :  { %v1420_v36 = vpop.permute.xlu1 %1419  ;;  %v1425_v48 = vpop.permute.xlu0 %1424 }
 0x769   :  { %v1441_v46 = vmul.f32 %v3110_v12, %v1420_v36  ;;  %v1442_v52 = vmul.f32 %v3114_v6, %v1425_v48  ;;  %2091 = vmatprep.mubr.msk.bf16.mxu1 %vm236_vm2, %v1449_v51 }
 0x76b   :  { %v1450_v58 = vpack.c.bf16 %v1442_v52, %v1441_v46 }
 0x76d   :  { %2092 = vmatmul.mubr.msk.bf16.gmra.mrb[40].mxu1 %vm236_vm2, %v1450_v58 }
 0x828   :  { %v2081_v4 = vpop.f32.mrb[28].mxu1 }
 0x829   :  { %v3144_v5 = vadd.f32 %v2081_v4, %v1831_v62  ;;  %v1519_v44 = vpop.f32.mrb[29].mxu1 }
 0x82a   :  { %v3146_v8 = vadd.f32 %v1831_v62, %v1519_v44  ;;  %v2082_v43 = vpop.f32.mrb[30].mxu1 }
 0x82b   :  { %v1522_v61 = vpop.f32.mrb[31].mxu1  ;;  %1586 = vmax.xlane.f32.xlu0 %v3144_v5  ;;  %v3152_v9 = vadd.f32 %v2082_v43, %v1831_v62 }
 0x82c   :  { %v3149_v16 = vadd.f32 %v1831_v62, %v1522_v61  ;;  %1582 = vmax.xlane.f32.xlu1 %v3146_v8 }
 0x82f   :  { %1584 = vmax.xlane.f32.xlu0 %v3149_v16 }
 0x830   :  { %v2085_v10 = vpop.f32.mrb[32].mxu1  ;;  %1588 = vmax.xlane.f32.xlu1 %v3152_v9 }
 0x831   :  { %v3156_v12 = vadd.f32 %v2085_v10, %v1831_v62  ;;  %v1535_v49 = vpop.f32.mrb[33].mxu1 }
 0x832   :  { %v2086_v18 = vpop.f32.mrb[34].mxu1  ;;  %v3161_v2 = vadd.f32 %v1831_v62, %v1535_v49 }
 0x833   :  { %v3158_v50 = vadd.f32 %v2086_v18, %v1831_v62  ;;  %v1538_v6 = vpop.f32.mrb[35].mxu1  ;;  %1594 = vmax.xlane.f32.xlu0 %v3156_v12 }
 0x834   :  { %v3164_v1 = vadd.f32 %v1831_v62, %v1538_v6 }
 0x835   :  { %1596 = vmax.xlane.f32.xlu1 %v3158_v50 }
 0x837   :  { %1590 = vmax.xlane.f32.xlu0 %v3161_v2 }
 0x838   :  { %v2089_v17 = vpop.f32.mrb[36].mxu1 }
 0x839   :  { %v3167_v19 = vadd.f32 %v2089_v17, %v1831_v62  ;;  %v1551_v11 = vpop.f32.mrb[37].mxu1  ;;  %1592 = vmax.xlane.f32.xlu1 %v3164_v1 }
 0x83a   :  { %v2090_v20 = vpop.f32.mrb[38].mxu1  ;;  %v3173_v57 = vadd.f32 %v1831_v62, %v1551_v11 }
 0x83b   :  { %v3170_v3 = vadd.f32 %v2090_v20, %v1831_v62  ;;  %v1554_v7 = vpop.f32.mrb[39].mxu1  ;;  %1602 = vmax.xlane.f32.xlu0 %v3167_v19 }
 0x83c   :  { %v3176_v55 = vadd.f32 %v1831_v62, %v1554_v7 }
 0x83d   :  { %1604 = vmax.xlane.f32.xlu1 %v3170_v3 }
 0x83f   :  { %1598 = vmax.xlane.f32.xlu0 %v3173_v57 }
 0x840   :  { %v2093_v21 = vpop.f32.mrb[40].mxu1 }
 0x841   :  { %1600 = vmax.xlane.f32.xlu1 %v3176_v55  ;;  %v1567_v14 = vpop.f32.mrb[41].mxu1  ;;  %v3185_v25 = vadd.f32 %v2093_v21, %v1831_v62 }
 0x842   :  { %v3180_v27 = vadd.f32 %v1831_v62, %v1567_v14  ;;  %v2094_v22 = vpop.f32.mrb[42].mxu1 }
 0x843   :  { %v1570_v24 = vpop.f32.mrb[43].mxu1  ;;  %v3188_v26 = vadd.f32 %v2094_v22, %v1831_v62 }
 0x844   :  { %v3182_v63 = vadd.f32 %v1831_v62, %v1570_v24  ;;  %1606 = vmax.xlane.f32.xlu0 %v3180_v27 }
 0x846   :  { %1608 = vmax.xlane.f32.xlu1 %v3182_v63 }
 0x848   :  { %1610 = vmax.xlane.f32.xlu0 %v3185_v25 }
 0x84a   :  { %1612 = vmax.xlane.f32.xlu1 %v3188_v26 }
 0x8b8   :  { %v3192_v13 = vpop.xlane.xlu0 %1586 }
 0x8b9   :  { %v1616_v28 = vsub.f32 %v3144_v5, %v3192_v13  ;;  %v3196_v29 = vpop.xlane.xlu1 %1582 }
 0x8ba   :  { %v1614_v33 = vsub.f32 %v3146_v8, %v3196_v29 }
 0x8bb   :  { %v1634_v37 = vmul.f32 1.442695, %v1616_v28 }
 0x8bc   :  { %v3200_v32 = vpop.xlane.xlu0 %1584  ;;  %v1630_v42 = vmul.f32 1.442695, %v1614_v33 }
 0x8bd   :  { %2342 = vpow2.f32 %v1634_v37  ;;  %v3202_v23 = vpop.xlane.xlu1 %1588  ;;  %v1615_v56 = vsub.f32 %v3149_v16, %v3200_v32 }
 0x8be   :  { %v1617_v0 = vsub.f32 %v3152_v9, %v3202_v23  ;;  %2344 = vpow2.f32 %v1630_v42 }
 0x8bf   :  { %v1632_v60 = vmul.f32 1.442695, %v1615_v56 }
 0x8c0   :  { %v1636_v53 = vmul.f32 1.442695, %v1617_v0  ;;  %v3208_v15 = vpop.xlane.xlu0 %1594 }
 0x8c1   :  { %v1620_v31 = vsub.f32 %v3156_v12, %v3208_v15 }
 0x8c2   :  { %2346 = vpow2.f32 %v1636_v53  ;;  %v3212_v34 = vpop.xlane.xlu1 %1596 }
 0x8c3   :  { %v1642_v59 = vmul.f32 1.442695, %v1620_v31  ;;  %v1621_v38 = vsub.f32 %v3158_v50, %v3212_v34 }
 0x8c4   :  { %v3216_v54 = vpop.xlane.xlu0 %1590 }
 0x8c5   :  { %2348 = vpow2.f32 %v1642_v59  ;;  %v1618_v39 = vsub.f32 %v3161_v2, %v3216_v54  ;;  %v1644_v30 = vmul.f32 1.442695, %v1621_v38 }
 0x8c6   :  { %2350 = vpow2.f32 %v1632_v60  ;;  %v3220_v40 = vpop.xlane.xlu1 %1592 }
 0x8c7   :  { %v2343_v41 = vpop.eup %2342  ;;  %v1638_v45 = vmul.f32 1.442695, %v1618_v39  ;;  %v1619_v35 = vsub.f32 %v3164_v1, %v3220_v40 }
 0x8c8   :  { %1666 = vadd.xlane.f32.xlu0 %v2343_v41  ;;  %v3224_v47 = vpop.xlane.xlu0 %1602  ;;  %v2345_v46 = vpop.eup %2344 }
 0x8c9   :  { %2352 = vpow2.f32 %v1638_v45  ;;  %v1624_v51 = vsub.f32 %v3167_v19, %v3224_v47  ;;  %v1640_v36 = vmul.f32 1.442695, %v1619_v35 }
 0x8ca   :  { %2354 = vpow2.f32 %v1644_v30  ;;  %v3228_v48 = vpop.xlane.xlu1 %1604 }
 0x8cb   :  { %v1650_v52 = vmul.f32 1.442695, %v1624_v51  ;;  %v1625_v58 = vsub.f32 %v3170_v3, %v3228_v48 }
 0x8cc   :  { %v2347_v62 = vpop.eup %2346  ;;  %1662 = vadd.xlane.f32.xlu0 %v2345_v46  ;;  %v3232_v4 = vpop.xlane.xlu0 %1598 }
 0x8cd   :  { %2356 = vpow2.f32 %v1650_v52  ;;  %v1622_v44 = vsub.f32 %v3173_v57, %v3232_v4  ;;  %1668 = vadd.xlane.f32.xlu1 %v2347_v62  ;;  %v1652_v43 = vmul.f32 1.442695, %v1625_v58 }
 0x8ce   :  { %2358 = vpow2.f32 %v1640_v36  ;;  %v3236_v61 = vpop.xlane.xlu1 %1600 }
 0x8cf   :  { %v2349_v10 = vpop.eup %2348  ;;  %v1646_v49 = vmul.f32 1.442695, %v1622_v44  ;;  %v1623_v18 = vsub.f32 %v3176_v55, %v3236_v61 }
 0x8d0   :  { %v2351_v6 = vpop.eup %2350  ;;  %1674 = vadd.xlane.f32.xlu0 %v2349_v10 }
 0x8d1   :  { %2360 = vpow2.f32 %v1646_v49  ;;  %v1648_v17 = vmul.f32 1.442695, %v1623_v18  ;;  %1664 = vadd.xlane.f32.xlu1 %v2351_v6  ;;  %v3240_v11 = vpop.xlane.xlu0 %1606 }
 0x8d2   :  { %2362 = vpow2.f32 %v1652_v43  ;;  %v1626_v20 = vsub.f32 %v3180_v27, %v3240_v11 }
 0x8d3   :  { %v2353_v7 = vpop.eup %2352  ;;  %v3244_v21 = vpop.xlane.xlu1 %1608  ;;  %2364 = vpow2.f32 %v1648_v17 }
 0x8d4   :  { %v2355_v14 = vpop.eup %2354  ;;  %v1654_v22 = vmul.f32 1.442695, %v1626_v20  ;;  %v1627_v24 = vsub.f32 %v3182_v63, %v3244_v21  ;;  %1670 = vadd.xlane.f32.xlu0 %v2353_v7 }
 0x8d5   :  { %1676 = vadd.xlane.f32.xlu1 %v2355_v14  ;;  %v3248_v28 = vpop.xlane.xlu0 %1610 }
 0x8d6   :  { %2366 = vpow2.f32 %v1654_v22  ;;  %v1656_v33 = vmul.f32 1.442695, %v1627_v24  ;;  %v1628_v37 = vsub.f32 %v3185_v25, %v3248_v28 }
 0x8d7   :  { %v2357_v42 = vpop.eup %2356  ;;  %v3252_v56 = vpop.xlane.xlu1 %1612 }
 0x8d8   :  { %v2359_v0 = vpop.eup %2358  ;;  %v1658_v53 = vmul.f32 1.442695, %v1628_v37  ;;  %v1629_v31 = vsub.f32 %v3188_v26, %v3252_v56  ;;  %1682 = vadd.xlane.f32.xlu0 %v2357_v42  ;;  %2368 = vpow2.f32 %v1656_v33 }
 0x8d9   :  { %1672 = vadd.xlane.f32.xlu1 %v2359_v0 }
 0x8da   :  { %2370 = vpow2.f32 %v1658_v53  ;;  %v1660_v60 = vmul.f32 1.442695, %v1629_v31 }
 0x8db   :  { %v2361_v59 = vpop.eup %2360 }
 0x8dc   :  { %v2363_v38 = vpop.eup %2362  ;;  %1678 = vadd.xlane.f32.xlu0 %v2361_v59  ;;  %2372 = vpow2.f32 %v1660_v60 }
 0x8dd   :  { %1684 = vadd.xlane.f32.xlu1 %v2363_v38  ;;  %v2365_v39 = vpop.eup %2364 }
 0x8e0   :  { %v2367_v30 = vpop.eup %2366 }
 0x8e1   :  { %1680 = vadd.xlane.f32.xlu1 %v2365_v39  ;;  %1686 = vadd.xlane.f32.xlu0 %v2367_v30 }
 0x8e2   :  { %v2369_v41 = vpop.eup %2368 }
 0x8e4   :  { %v2371_v45 = vpop.eup %2370 }
 0x8e5   :  { %1688 = vadd.xlane.f32.xlu1 %v2369_v41  ;;  %1690 = vadd.xlane.f32.xlu0 %v2371_v45 }
 0x8e6   :  { %v2373_v35 = vpop.eup %2372 }
 0x8e9   :  { %1692 = vadd.xlane.f32.xlu1 %v2373_v35 }
 0x955   :  { %v1667_v51 = vpop.xlane.xlu0 %1666 }
 0x956   :  { %2374 = vlog2.f32 %v1667_v51 }
 0x959   :  { %v1663_v36 = vpop.xlane.xlu0 %1662 }
 0x95a   :  { %2376 = vlog2.f32 %v1663_v36  ;;  %v1669_v46 = vpop.xlane.xlu1 %1668 }
 0x95b   :  { %2378 = vlog2.f32 %v1669_v46 }
 0x95d   :  { %v1675_v52 = vpop.xlane.xlu0 %1674 }
 0x95e   :  { %2380 = vlog2.f32 %v1675_v52  ;;  %v1665_v58 = vpop.xlane.xlu1 %1664 }
 0x95f   :  { %2382 = vlog2.f32 %v1665_v58 }
 0x960   :  { %v2375_v62 = vpop.eup %2374 }
 0x961   :  { %v1699_v44 = vmul.f32 0.6931472, %v2375_v62  ;;  %v1671_v43 = vpop.xlane.xlu0 %1670 }
 0x962   :  { %2384 = vlog2.f32 %v1671_v43  ;;  %v1677_v10 = vpop.xlane.xlu1 %1676 }
 0x963   :  { %v1728_v49 = vadd.f32 %v1699_v44, %v3192_v13  ;;  %2386 = vlog2.f32 %v1677_v10 }
 0x964   :  { %v2377_v18 = vpop.eup %2376 }
 0x965   :  { %v2379_v6 = vpop.eup %2378  ;;  %v1744_v17 = vsub.f32 %v3144_v5, %v1728_v49  ;;  %v1695_v20 = vmul.f32 0.6931472, %v2377_v18  ;;  %v1683_v7 = vpop.xlane.xlu0 %1682 }
 0x966   :  { %v1701_v14 = vmul.f32 0.6931472, %v2379_v6  ;;  %2388 = vlog2.f32 %v1683_v7  ;;  %v1673_v22 = vpop.xlane.xlu1 %1672 }
 0x967   :  { %1760 = vst [vmem:[#allocation4 + $0x10] sm:$0xff] %v1744_v17  ;;  %v1726_v24 = vadd.f32 %v1695_v20, %v3196_v29  ;;  %2390 = vlog2.f32 %v1673_v22 }
 0x968   :  { %v2381_v33 = vpop.eup %2380  ;;  %v1729_v37 = vadd.f32 %v1701_v14, %v3202_v23 }
 0x969   :  { %v2383_v42 = vpop.eup %2382  ;;  %v1742_v13 = vsub.f32 %v3146_v8, %v1726_v24  ;;  %v1707_v0 = vmul.f32 0.6931472, %v2381_v33  ;;  %v1679_v53 = vpop.xlane.xlu0 %1678 }
 0x96a   :  { %v1745_v31 = vsub.f32 %v3152_v9, %v1729_v37  ;;  %v1697_v5 = vmul.f32 0.6931472, %v2383_v42  ;;  %2392 = vlog2.f32 %v1679_v53  ;;  %v1685_v60 = vpop.xlane.xlu1 %1684 }
 0x96b   :  { %1758 = vst [vmem:[#allocation4] sm:$0xff] %v1742_v13  ;;  %v1732_v59 = vadd.f32 %v1707_v0, %v3208_v15  ;;  %2394 = vlog2.f32 %v1685_v60 }
 0x96c   :  { %v2385_v38 = vpop.eup %2384  ;;  %1761 = vst [vmem:[#allocation4 + $0x18] sm:$0xff] %v1745_v31  ;;  %v1727_v29 = vadd.f32 %v1697_v5, %v3200_v32 }
 0x96d   :  { %v2387_v39 = vpop.eup %2386  ;;  %v1748_v23 = vsub.f32 %v3156_v12, %v1732_v59  ;;  %v1703_v30 = vmul.f32 0.6931472, %v2385_v38 }
 0x96e   :  { %v1743_v8 = vsub.f32 %v3149_v16, %v1727_v29  ;;  %v1709_v41 = vmul.f32 0.6931472, %v2387_v39  ;;  %v1681_v45 = vpop.xlane.xlu1 %1680  ;;  %v1687_v9 = vpop.xlane.xlu0 %1686 }
 0x96f   :  { %1764 = vst [vmem:[#allocation4 + $0x30] sm:$0xff] %v1748_v23  ;;  %v1730_v35 = vadd.f32 %v1703_v30, %v3216_v54  ;;  %2396 = vlog2.f32 %v1681_v45 }
 0x970   :  { %v2389_v51 = vpop.eup %2388  ;;  %1759 = vst [vmem:[#allocation4 + $0x8] sm:$0xff] %v1743_v8  ;;  %v1733_v15 = vadd.f32 %v1709_v41, %v3212_v34  ;;  %2398 = vlog2.f32 %v1687_v9 }
 0x971   :  { %v2391_v36 = vpop.eup %2390  ;;  %v1746_v32 = vsub.f32 %v3161_v2, %v1730_v35  ;;  %v1715_v46 = vmul.f32 0.6931472, %v2389_v51 }
 0x972   :  { %v1749_v12 = vsub.f32 %v3158_v50, %v1733_v15  ;;  %v1705_v52 = vmul.f32 0.6931472, %v2391_v36  ;;  %v1689_v16 = vpop.xlane.xlu1 %1688  ;;  %v1691_v58 = vpop.xlane.xlu0 %1690 }
 0x973   :  { %1762 = vst [vmem:[#allocation4 + $0x20] sm:$0xff] %v1746_v32  ;;  %v1736_v62 = vadd.f32 %v1715_v46, %v3224_v47  ;;  %2400 = vlog2.f32 %v1689_v16 }
 0x974   :  { %v2393_v54 = vpop.eup %2392  ;;  %1765 = vst [vmem:[#allocation4 + $0x38] sm:$0xff] %v1749_v12  ;;  %v1731_v44 = vadd.f32 %v1705_v52, %v3220_v40  ;;  %2402 = vlog2.f32 %v1691_v58 }
 0x975   :  { %v2395_v34 = vpop.eup %2394  ;;  %v1752_v43 = vsub.f32 %v3167_v19, %v1736_v62  ;;  %v1711_v10 = vmul.f32 0.6931472, %v2393_v54 }
 0x976   :  { %v1747_v2 = vsub.f32 %v3164_v1, %v1731_v44  ;;  %v1717_v49 = vmul.f32 0.6931472, %v2395_v34  ;;  %v1693_v50 = vpop.xlane.xlu1 %1692 }
 0x977   :  { %1768 = vst [vmem:[#allocation4 + $0x50] sm:$0xff] %v1752_v43  ;;  %v1734_v18 = vadd.f32 %v1711_v10, %v3232_v4  ;;  %2404 = vlog2.f32 %v1693_v50 }
 0x978   :  { %1763 = vst [vmem:[#allocation4 + $0x28] sm:$0xff] %v1747_v2  ;;  %v1737_v47 = vadd.f32 %v1717_v49, %v3228_v48 }
 0x979   :  { %v2397_v6 = vpop.eup %2396  ;;  %v1750_v17 = vsub.f32 %v3173_v57, %v1734_v18 }
 0x97a   :  { %v2399_v40 = vpop.eup %2398  ;;  %v1753_v20 = vsub.f32 %v3170_v3, %v1737_v47  ;;  %v1713_v7 = vmul.f32 0.6931472, %v2397_v6 }
 0x97b   :  { %1766 = vst [vmem:[#allocation4 + $0x40] sm:$0xff] %v1750_v17  ;;  %v1719_v19 = vmul.f32 0.6931472, %v2399_v40 }
 0x97c   :  { %1769 = vst [vmem:[#allocation4 + $0x58] sm:$0xff] %v1753_v20  ;;  %v1735_v1 = vadd.f32 %v1713_v7, %v3236_v61 }
 0x97d   :  { %v2401_v14 = vpop.eup %2400  ;;  %v1738_v22 = vadd.f32 %v1719_v19, %v3240_v11 }
 0x97e   :  { %v2403_v4 = vpop.eup %2402  ;;  %v1751_v24 = vsub.f32 %v3176_v55, %v1735_v1  ;;  %v1721_v33 = vmul.f32 0.6931472, %v2401_v14 }
 0x97f   :  { %v1754_v48 = vsub.f32 %v3180_v27, %v1738_v22  ;;  %v1723_v37 = vmul.f32 0.6931472, %v2403_v4 }
 0x980   :  { %1767 = vst [vmem:[#allocation4 + $0x48] sm:$0xff] %v1751_v24  ;;  %v1739_v57 = vadd.f32 %v1721_v33, %v3244_v21 }
 0x981   :  { %v2405_v3 = vpop.eup %2404  ;;  %1770 = vst [vmem:[#allocation4 + $0x60] sm:$0xff] %v1754_v48  ;;  %v1740_v42 = vadd.f32 %v1723_v37, %v3248_v28 }
 0x982   :  { %v1755_v13 = vsub.f32 %v3182_v63, %v1739_v57  ;;  %v1725_v61 = vmul.f32 0.6931472, %v2405_v3 }
 0x983   :  { %v1756_v0 = vsub.f32 %v3185_v25, %v1740_v42 }
 0x984   :  { %1771 = vst [vmem:[#allocation4 + $0x68] sm:$0xff] %v1755_v13  ;;  %v1741_v55 = vadd.f32 %v1725_v61, %v3252_v56 }
 0x985   :  { %1772 = vst [vmem:[#allocation4 + $0x70] sm:$0xff] %v1756_v0 }
 0x986   :  { %v1757_v27 = vsub.f32 %v3188_v26, %v1741_v55 }
 0x988   :  { %1773 = vst [vmem:[#allocation4 + $0x78] sm:$0xff] %v1757_v27 }
 0x989   :  { %2417 = shalt.err (!%p2414_p4)
}
 0x98a   :  { %s2418_s16 = scalar_lea.hbm %s3307_s7, 2048 }
 0x98b   :  { %p2419_p5 = scmp.ne.s32.totalorder %s3307_s7, %s2418_s16  ;;  %p2422_p6 = scmp.lt.u32.totalorder %s2418_s16, %s3307_s7 }
 0x98d   :  { %p2424_p7 = pnand %p2422_p6, %p2419_p5 }
 0x98f   :  { %2427 = shalt.err (!%p2424_p7)
}
 0x990   :  { %s2433_s20 = smov 128   ;;  %s2434_s21 = smov 8  }
 0x991   :  { %1785 = dma.vmem_to_hbm [thread:$0]  %s1780_s12, 2048, %s3307_s7, [#allocation5], %s2433_s20, %s2433_s20, %s2434_s21  }
 0x992   :  { %2428 = dma.done.wait [#allocation5], 2048  }
 0x993   :  { %2429 = vsyncadd [#allocation5], 4294965248 }
 0x994   :  { %1789 = vsyncpa [#allocation5], 1 }

</bundles_post_ra>
